<compile_context>
chip_gen: v7x
topology: tpu7x:2x2x1
jax: 0.10.0
libtpu: 0.0.40
codegen_flags: <defaults>
</compile_context>

<pallas_src>
import jax
import jax.numpy as jnp
import numpy as np
from jax.experimental import pallas as pl
from jax.experimental.pallas import tpu as pltpu

C1, C2, C3 = 128, 256, 128          # conv1/conv2/conv3 output channels
K1, K2, K3 = 7, 5, 3                # kernel sizes
PAD = 2                             # shared conv padding
BN_EPS = 1e-5
LANE = 128
SUB = 8                             # sublane granule for fused-M padding
LEAD = 8                            # sublane-aligned leading halo in scratch


def _round_up(v, m):
    return (v + m - 1) // m * m


def ttefcn_forward(x, p, drop_mask):
    """x: (B, input_dims, L) float32 in PyTorch NCW layout."""
    B, ID, L = (int(d) for d in x.shape)
    nc = int(p['fc2w'].shape[0])
    nf_pad = _round_up(nc, LANE)                 # lane-dense output, sliced after

    L1 = L + 2 * PAD - K1 + 1                    # conv1 output length
    L2 = L1 + 2 * PAD - K2 + 1                   # conv2 output length
    L3 = L2 + 2 * PAD - K3 + 1                   # conv3 output length
    L1p, L2p, L3p = (_round_up(v, SUB) for v in (L1, L2, L3))
    M1, M2, M3 = B * L1p, B * L2p, B * L3p       # fused (batch-folded) M dims
    # scratch time extents: must cover every row a tap window can read
    Lp1 = _round_up(max(L2p + (LEAD - PAD) + K2 - 1, LEAD + L1p), SUB)
    Lp2 = _round_up(max(L3p + (LEAD - PAD) + K3 - 1, LEAD + L2p), SUB)

    # ---------------- wrapper-side layout plumbing (XLA) --------------------
    # conv1 im2col built host-side (pure data movement on the raw input); the
    # per-batch pad rows [L1, L1p) are exact zeros so BN sums stay clean.
    x_t = jnp.transpose(x, (0, 2, 1)).astype(jnp.float32)          # (B, L, ID)
    xp = jnp.pad(x_t, ((0, 0), (PAD, PAD), (0, 0)))                # (B, L+4, ID)
    cols1 = jnp.concatenate([xp[:, k:k + L1, :] for k in range(K1)], axis=-1)
    cols1 = jnp.pad(cols1, ((0, 0), (0, L1p - L1), (0, 0)))
    cols1 = cols1.reshape(M1, K1 * ID).astype(jnp.bfloat16)

    # im2col weight layouts: row index = tap * C_in + c_in; bf16 MXU inputs
    w1 = jnp.transpose(p['w1'], (2, 1, 0)).reshape(K1 * ID, C1).astype(jnp.bfloat16)
    w2 = jnp.transpose(p['w2'], (2, 1, 0)).reshape(K2 * C1, C2).astype(jnp.bfloat16)
    w3 = jnp.transpose(p['w3'], (2, 1, 0)).reshape(K3 * C2, C3).astype(jnp.bfloat16)
    fc1w = jnp.transpose(p['fc1w'])                                # (128, 128) f32
    fc1b = p['fc1b'].reshape(1, 128)
    fc2w = jnp.zeros((C3, nf_pad), jnp.float32).at[:, :nc].set(jnp.transpose(p['fc2w']))
    fc2b = jnp.zeros((1, nf_pad), jnp.float32).at[:, :nc].set(p['fc2b'][None, :])

    # valid-row indicator vectors (1, M): mask pad rows out of the BN sums
    def valid_rows(lpad, lvalid):
        v = np.zeros((1, B * lpad), np.float32)
        for b in range(B):
            v[0, b * lpad:b * lpad + lvalid] = 1.0
        return jnp.asarray(v)
    vr1, vr2, vr3 = valid_rows(L1p, L1), valid_rows(L2p, L2), valid_rows(L3p, L3)

    # AdaptiveAvgPool1d(1) as a (B, M3) pooling matrix (skips pad rows)
    pool_np = np.zeros((B, M3), np.float32)
    for b in range(B):
        pool_np[b, b * L3p:b * L3p + L3] = 1.0 / L3
    pool = jnp.asarray(pool_np)

    inputs = [
        cols1,
        w1, p['g1'].reshape(1, C1), p['be1'].reshape(1, C1), vr1,
        w2, p['g2'].reshape(1, C2), p['be2'].reshape(1, C2), vr2,
        w3, p['g3'].reshape(1, C3), p['be3'].reshape(1, C3), vr3,
        pool, fc1w, fc1b, drop_mask, fc2w, fc2b,
    ]

    # ------------------------------ kernel ----------------------------------
    def kernel(cols1_ref, w1_ref, g1_ref, be1_ref, vr1_ref,
               w2_ref, g2_ref, be2_ref, vr2_ref,
               w3_ref, g3_ref, be3_ref, vr3_ref,
               pool_ref, fc1w_ref, fc1b_ref, drop_ref, fc2w_ref, fc2b_ref,
               out_ref, h1pad_ref, h2pad_ref):

        def bn_sigmoid(a, vr_ref, nvalid, g_ref, be_ref):
            # training-mode BatchNorm1d (biased stats, single pass) + Sigmoid.
            # Conv bias is omitted upstream: it cancels exactly under BN.
            inv_n = 1.0 / float(nvalid)
            s = jnp.dot(vr_ref[...], a, preferred_element_type=jnp.float32)
            s2 = jnp.dot(vr_ref[...], a * a, preferred_element_type=jnp.float32)
            mean = s * inv_n
            var = jnp.maximum(s2 * inv_n - mean * mean, 0.0)
            scale = jax.lax.rsqrt(var + BN_EPS) * g_ref[...]
            shift = be_ref[...] - mean * scale
            y = a * scale + shift
            return 0.5 * jnp.tanh(0.5 * y) + 0.5          # nn.Sigmoid(), 1 EUP op

        def im2col(src_ref, ntaps, lwin):
            # Batch-folded im2col: per-batch tap windows concatenated on lanes,
            # batch blocks stacked on sublanes -> one (B*lwin, ntaps*Cin) bf16
            # matrix feeding a single MXU dot.
            # TODO(synk): for large lwin tile this into ~128-256 row chunks (or
            #             accumulate per-tap matmuls) instead of one big cols.
            blocks = []
            for b in range(B):
                blocks.append(jnp.concatenate(
                    [src_ref[b, LEAD - PAD + k:LEAD - PAD + k + lwin, :]
                     for k in range(ntaps)], axis=-1))
            return jnp.concatenate(blocks, axis=0)

        def store_padded(dst_ref, h, lwin, lvalid):
            # zero leading halo, write sublane-aligned full blocks (bf16), then
            # re-zero every tail row (pad-row garbage + right halo + slack).
            cdim = dst_ref.shape[2]
            dst_ref[:, :LEAD, :] = jnp.zeros((B, LEAD, cdim), dst_ref.dtype)
            for b in range(B):
                dst_ref[b, LEAD:LEAD + lwin, :] = (
                    h[b * lwin:(b + 1) * lwin, :].astype(dst_ref.dtype))
            tail = dst_ref.shape[1] - (LEAD + lvalid)
            dst_ref[:, LEAD + lvalid:, :] = jnp.zeros((B, tail, cdim), dst_ref.dtype)

        # ---- conv1 (ID->128, k7) -> bn1 -> sigmoid : one (M1,K1*ID) bf16 dot
        a1 = jnp.dot(cols1_ref[...], w1_ref[...], preferred_element_type=jnp.float32)
        h1 = bn_sigmoid(a1, vr1_ref, B * L1, g1_ref, be1_ref)        # (M1,128) f32
        store_padded(h1pad_ref, h1, L1p, L1)

        # ---- conv2 (128->256, k5) -> bn2 -> sigmoid : (M2,640)@(640,256) bf16
        a2 = jnp.dot(im2col(h1pad_ref, K2, L2p), w2_ref[...],
                     preferred_element_type=jnp.float32)
        h2 = bn_sigmoid(a2, vr2_ref, B * L2, g2_ref, be2_ref)        # (M2,256) f32
        store_padded(h2pad_ref, h2, L2p, L2)

        # ---- conv3 (256->128, k3) -> bn3 -> sigmoid : (M3,768)@(768,128) bf16
        a3 = jnp.dot(im2col(h2pad_ref, K3, L3p), w3_ref[...],
                     preferred_element_type=jnp.float32)
        h3 = bn_sigmoid(a3, vr3_ref, B * L3, g3_ref, be3_ref)        # (M3,128) f32

        # ---- AdaptiveAvgPool1d(1) -> Linear -> Dropout -> Linear ----------
        avg = jnp.dot(pool_ref[...], h3, preferred_element_type=jnp.float32)
        ful1 = jnp.dot(avg, fc1w_ref[...],
                       preferred_element_type=jnp.float32) + fc1b_ref[...]
        dropped = ful1 * drop_ref[...]                               # pre-scaled mask
        out_ref[...] = jnp.dot(dropped, fc2w_ref[...],
                               preferred_element_type=jnp.float32) + fc2b_ref[...]

    # --------------------------- VMEM budgeting -----------------------------
    def _nbytes(a):
        return int(np.prod(a.shape)) * jnp.dtype(a.dtype).itemsize
    scratch_bytes = (B * Lp1 * C1 + B * Lp2 * C2) * 2                # bf16 scratch
    work_bytes = (M1 * (K1 * ID * 2 + 3 * C1 * 4) +
                  M2 * (K2 * C1 * 2 + 3 * C2 * 4) +
                  M3 * (K3 * C2 * 2 + 3 * C3 * 4))
    in_bytes = sum(_nbytes(a) for a in inputs)
    vmem_limit = int(min(max(4 * (in_bytes + scratch_bytes + work_bytes),
                             8 * 1024 * 1024), 64 * 1024 * 1024))

    out = pl.pallas_call(
        kernel,
        out_shape=jax.ShapeDtypeStruct((B, nf_pad), jnp.float32),
        in_specs=[pl.BlockSpec(memory_space=pltpu.MemorySpace.VMEM)] * len(inputs),
        out_specs=pl.BlockSpec(memory_space=pltpu.MemorySpace.VMEM),
        scratch_shapes=[
            pltpu.VMEM((B, Lp1, C1), jnp.bfloat16),   # time-padded conv1 output
            pltpu.VMEM((B, Lp2, C2), jnp.bfloat16),   # time-padded conv2 output
        ],
        compiler_params=pltpu.CompilerParams(vmem_limit_bytes=vmem_limit),
    )(*inputs)
    return out[:, :nc]


def init_params(key, input_dims, num_classes):
    ks = jax.random.split(key, 16)
    rnd = lambda k, shape, s=0.1: s * jax.random.normal(k, shape, dtype=jnp.float32)
    return {
        'w1': rnd(ks[0], (C1, input_dims, K1)), 'b1': rnd(ks[1], (C1,)),
        'w2': rnd(ks[2], (C2, C1, K2)),         'b2': rnd(ks[3], (C2,)),
        'w3': rnd(ks[4], (C3, C2, K3)),         'b3': rnd(ks[5], (C3,)),
        'g1': 1.0 + rnd(ks[6], (C1,)),  'be1': rnd(ks[7], (C1,)),
        'g2': 1.0 + rnd(ks[8], (C2,)),  'be2': rnd(ks[9], (C2,)),
        'g3': 1.0 + rnd(ks[10], (C3,)), 'be3': rnd(ks[11], (C3,)),
        'fc1w': rnd(ks[12], (128, C3)), 'fc1b': rnd(ks[13], (128,)),
        'fc2w': rnd(ks[14], (num_classes, 128)), 'fc2b': rnd(ks[15], (num_classes,)),
    }


def reference_forward(x, p, drop_mask):
    """Pure-JAX reference mirroring the PyTorch forward (NCW layout, f32)."""
    def conv1d(inp, w, b, pad):
        out = jax.lax.conv_general_dilated(
            inp, w, window_strides=(1,), padding=[(pad, pad)],
            dimension_numbers=('NCW', 'OIW', 'NCW'))
        return out + b[None, :, None]

    def bn(h, g, be):
        m = jnp.mean(h, axis=(0, 2), keepdims=True)
        v = jnp.mean((h - m) ** 2, axis=(0, 2), keepdims=True)
        return (h - m) / jnp.sqrt(v + BN_EPS) * g[None, :, None] + be[None, :, None]

    sig = jax.nn.sigmoid
    h = sig(bn(conv1d(x, p['w1'], p['b1'], PAD), p['g1'], p['be1']))
    h = sig(bn(conv1d(h, p['w2'], p['b2'], PAD), p['g2'], p['be2']))
    h = sig(bn(conv1d(h, p['w3'], p['b3'], PAD), p['g3'], p['be3']))
    avg = jnp.mean(h, axis=2)                                   # AdaptiveAvgPool1d(1)
    ful1 = avg @ jnp.transpose(p['fc1w']) + p['fc1b'][None, :]
    dropped = ful1 * drop_mask                                  # Dropout(p=0.5), train
    return dropped @ jnp.transpose(p['fc2w']) + p['fc2b'][None, :]


if __name__ == "__main__":
    B, input_dims, L, num_classes = 2, 1, 16, 6
    key = jax.random.PRNGKey(0)
    pkey, xkey, dkey = jax.random.split(key, 3)
    params = init_params(pkey, input_dims, num_classes)
    x = jax.random.normal(xkey, (B, input_dims, L), dtype=jnp.float32)

    # train-mode Dropout(p=0.5): keep with prob 0.5, scale kept units by 1/(1-p)=2
    keep = jax.random.bernoulli(dkey, 0.5, (B, 128))
    drop_mask = keep.astype(jnp.float32) / 0.5

    out = jax.block_until_ready(ttefcn_forward(x, params, drop_mask))
    ref = jax.block_until_ready(reference_forward(x, params, drop_mask))
    # bf16 MXU inputs dominate the (small, ~1e-3) error; approx reciprocal was
    # removed in favour of the exact tanh-based sigmoid.
    np.testing.assert_allclose(np.asarray(out), np.asarray(ref), rtol=3e-2, atol=3e-2)
    print("KERNEL_OK")
</pallas_src>

<mosaic_0001>
module attributes {stable_mosaic.version = 11 : i64} {
  func.func @kernel(%arg0: memref<32x7xbf16, #tpu.memory_space<vmem>>, %arg1: memref<7x128xbf16, #tpu.memory_space<vmem>>, %arg2: memref<1x128xf32, #tpu.memory_space<vmem>>, %arg3: memref<1x128xf32, #tpu.memory_space<vmem>>, %arg4: memref<1x32xf32, #tpu.memory_space<vmem>>, %arg5: memref<640x256xbf16, #tpu.memory_space<vmem>>, %arg6: memref<1x256xf32, #tpu.memory_space<vmem>>, %arg7: memref<1x256xf32, #tpu.memory_space<vmem>>, %arg8: memref<1x32xf32, #tpu.memory_space<vmem>>, %arg9: memref<768x128xbf16, #tpu.memory_space<vmem>>, %arg10: memref<1x128xf32, #tpu.memory_space<vmem>>, %arg11: memref<1x128xf32, #tpu.memory_space<vmem>>, %arg12: memref<1x32xf32, #tpu.memory_space<vmem>>, %arg13: memref<2x32xf32, #tpu.memory_space<vmem>>, %arg14: memref<128x128xf32, #tpu.memory_space<vmem>>, %arg15: memref<1x128xf32, #tpu.memory_space<vmem>>, %arg16: memref<2x128xf32, #tpu.memory_space<vmem>>, %arg17: memref<128x128xf32, #tpu.memory_space<vmem>>, %arg18: memref<1x128xf32, #tpu.memory_space<vmem>>, %arg19: memref<2x128xf32, #tpu.memory_space<vmem>>, %arg20: memref<2x32x128xbf16, #tpu.memory_space<vmem>>, %arg21: memref<2x24x256xbf16, #tpu.memory_space<vmem>>) attributes {dimension_semantics = [], scalar_prefetch = 0 : i64, scratch_operands = 2 : i64, tpu.core_type = #tpu.core_type<tc>} {
    %c0 = arith.constant 0 : index
    %c0_0 = arith.constant 0 : index
    %0 = vector.load %arg0[%c0, %c0_0] : memref<32x7xbf16, #tpu.memory_space<vmem>>, vector<32x7xbf16>
    %c0_1 = arith.constant 0 : index
    %c0_2 = arith.constant 0 : index
    %1 = vector.load %arg1[%c0_1, %c0_2] : memref<7x128xbf16, #tpu.memory_space<vmem>>, vector<7x128xbf16>
    %cst = arith.constant dense<0.000000e+00> : vector<32x128xf32>
    %2 = tpu.matmul %0, %1, %cst {dimension_numbers = #tpu.dot_dimension_numbers<[1], [0], [0], [1], [0, 0, 1, 1], [], []>} : vector<32x7xbf16>, vector<7x128xbf16>, vector<32x128xf32> -> vector<32x128xf32>
    %c0_3 = arith.constant 0 : index
    %c0_4 = arith.constant 0 : index
    %3 = vector.load %arg4[%c0_3, %c0_4] : memref<1x32xf32, #tpu.memory_space<vmem>>, vector<1x32xf32>
    %cst_5 = arith.constant dense<0.000000e+00> : vector<1x128xf32>
    %4 = tpu.matmul %3, %2, %cst_5 {dimension_numbers = #tpu.dot_dimension_numbers<[1], [0], [0], [1], [0, 0, 1, 1], [], []>} : vector<1x32xf32>, vector<32x128xf32>, vector<1x128xf32> -> vector<1x128xf32>
    %c0_6 = arith.constant 0 : index
    %c0_7 = arith.constant 0 : index
    %5 = vector.load %arg4[%c0_6, %c0_7] : memref<1x32xf32, #tpu.memory_space<vmem>>, vector<1x32xf32>
    %6 = arith.mulf %2, %2 : vector<32x128xf32>
    %cst_8 = arith.constant dense<0.000000e+00> : vector<1x128xf32>
    %7 = tpu.matmul %5, %6, %cst_8 {dimension_numbers = #tpu.dot_dimension_numbers<[1], [0], [0], [1], [0, 0, 1, 1], [], []>} : vector<1x32xf32>, vector<32x128xf32>, vector<1x128xf32> -> vector<1x128xf32>
    %cst_9 = arith.constant 0.0357142873 : f32
    %8 = vector.broadcast %cst_9 : f32 to vector<1x128xf32>
    %9 = arith.mulf %4, %8 : vector<1x128xf32>
    %cst_10 = arith.constant 0.0357142873 : f32
    %10 = vector.broadcast %cst_10 : f32 to vector<1x128xf32>
    %11 = arith.mulf %7, %10 : vector<1x128xf32>
    %12 = arith.mulf %9, %9 : vector<1x128xf32>
    %13 = arith.subf %11, %12 : vector<1x128xf32>
    %cst_11 = arith.constant 0.000000e+00 : f32
    %14 = vector.broadcast %cst_11 : f32 to vector<1x128xf32>
    %15 = arith.maximumf %13, %14 : vector<1x128xf32>
    %cst_12 = arith.constant 9.99999974E-6 : f32
    %16 = vector.broadcast %cst_12 : f32 to vector<1x128xf32>
    %17 = arith.addf %15, %16 : vector<1x128xf32>
    %18 = math.rsqrt %17 : vector<1x128xf32>
    %c0_13 = arith.constant 0 : index
    %c0_14 = arith.constant 0 : index
    %19 = vector.load %arg2[%c0_13, %c0_14] : memref<1x128xf32, #tpu.memory_space<vmem>>, vector<1x128xf32>
    %20 = arith.mulf %18, %19 : vector<1x128xf32>
    %c0_15 = arith.constant 0 : index
    %c0_16 = arith.constant 0 : index
    %21 = vector.load %arg3[%c0_15, %c0_16] : memref<1x128xf32, #tpu.memory_space<vmem>>, vector<1x128xf32>
    %22 = arith.mulf %9, %20 : vector<1x128xf32>
    %23 = arith.subf %21, %22 : vector<1x128xf32>
    %24 = vector.broadcast %20 : vector<1x128xf32> to vector<32x128xf32>
    %25 = arith.mulf %2, %24 : vector<32x128xf32>
    %26 = vector.broadcast %23 : vector<1x128xf32> to vector<32x128xf32>
    %27 = arith.addf %25, %26 : vector<32x128xf32>
    %cst_17 = arith.constant 5.000000e-01 : f32
    %28 = vector.broadcast %cst_17 : f32 to vector<32x128xf32>
    %29 = arith.mulf %28, %27 : vector<32x128xf32>
    %30 = math.tanh %29 : vector<32x128xf32>
    %cst_18 = arith.constant 5.000000e-01 : f32
    %31 = vector.broadcast %cst_18 : f32 to vector<32x128xf32>
    %32 = arith.mulf %31, %30 : vector<32x128xf32>
    %cst_19 = arith.constant 5.000000e-01 : f32
    %33 = vector.broadcast %cst_19 : f32 to vector<32x128xf32>
    %34 = arith.addf %32, %33 : vector<32x128xf32>
    %cst_20 = arith.constant 0.000000e+00 : bf16
    %35 = vector.broadcast %cst_20 : bf16 to vector<2x8x128xbf16>
    %c0_21 = arith.constant 0 : index
    %c0_22 = arith.constant 0 : index
    %c0_23 = arith.constant 0 : index
    %36 = vector.load %arg20[%c0_21, %c0_22, %c0_23] : memref<2x32x128xbf16, #tpu.memory_space<vmem>>, vector<2x8x128xbf16>
    tpu.vector_store %arg20[%c0_21, %c0_22, %c0_23], %35 {strides = array<i32>} : memref<2x32x128xbf16, #tpu.memory_space<vmem>>, vector<2x8x128xbf16>,
    %37 = vector.extract_strided_slice %34 {offsets = [0, 0], sizes = [16, 128], strides = [1, 1]} : vector<32x128xf32> to vector<16x128xf32>
    %38 = arith.truncf %37 : vector<16x128xf32> to vector<16x128xbf16>
    %c0_24 = arith.constant 0 : index
    %c8 = arith.constant 8 : index
    %c0_25 = arith.constant 0 : index
    %39 = vector.load %arg20[%c0_24, %c8, %c0_25] : memref<2x32x128xbf16, #tpu.memory_space<vmem>>, vector<1x16x128xbf16>
    %40 = vector.shape_cast %39 : vector<1x16x128xbf16> to vector<16x128xbf16>
    %41 = vector.shape_cast %38 : vector<16x128xbf16> to vector<1x16x128xbf16>
    tpu.vector_store %arg20[%c0_24, %c8, %c0_25], %41 {strides = array<i32>} : memref<2x32x128xbf16, #tpu.memory_space<vmem>>, vector<1x16x128xbf16>,
    %42 = vector.extract_strided_slice %34 {offsets = [16, 0], sizes = [16, 128], strides = [1, 1]} : vector<32x128xf32> to vector<16x128xf32>
    %43 = arith.truncf %42 : vector<16x128xf32> to vector<16x128xbf16>
    %c1 = arith.constant 1 : index
    %c8_26 = arith.constant 8 : index
    %c0_27 = arith.constant 0 : index
    %44 = vector.load %arg20[%c1, %c8_26, %c0_27] : memref<2x32x128xbf16, #tpu.memory_space<vmem>>, vector<1x16x128xbf16>
    %45 = vector.shape_cast %44 : vector<1x16x128xbf16> to vector<16x128xbf16>
    %46 = vector.shape_cast %43 : vector<16x128xbf16> to vector<1x16x128xbf16>
    tpu.vector_store %arg20[%c1, %c8_26, %c0_27], %46 {strides = array<i32>} : memref<2x32x128xbf16, #tpu.memory_space<vmem>>, vector<1x16x128xbf16>,
    %cst_28 = arith.constant 0.000000e+00 : bf16
    %47 = vector.broadcast %cst_28 : bf16 to vector<2x10x128xbf16>
    %c0_29 = arith.constant 0 : index
    %c22 = arith.constant 22 : index
    %c0_30 = arith.constant 0 : index
    %48 = vector.load %arg20[%c0_29, %c22, %c0_30] : memref<2x32x128xbf16, #tpu.memory_space<vmem>>, vector<2x10x128xbf16>
    tpu.vector_store %arg20[%c0_29, %c22, %c0_30], %47 {strides = array<i32>} : memref<2x32x128xbf16, #tpu.memory_space<vmem>>, vector<2x10x128xbf16>,
    %c0_31 = arith.constant 0 : index
    %c6 = arith.constant 6 : index
    %c0_32 = arith.constant 0 : index
    %49 = vector.load %arg20[%c0_31, %c6, %c0_32] : memref<2x32x128xbf16, #tpu.memory_space<vmem>>, vector<1x16x128xbf16>
    %50 = vector.shape_cast %49 : vector<1x16x128xbf16> to vector<16x128xbf16>
    %c0_33 = arith.constant 0 : index
    %c7 = arith.constant 7 : index
    %c0_34 = arith.constant 0 : index
    %51 = vector.load %arg20[%c0_33, %c7, %c0_34] : memref<2x32x128xbf16, #tpu.memory_space<vmem>>, vector<1x16x128xbf16>
    %52 = vector.shape_cast %51 : vector<1x16x128xbf16> to vector<16x128xbf16>
    %c0_35 = arith.constant 0 : index
    %c8_36 = arith.constant 8 : index
    %c0_37 = arith.constant 0 : index
    %53 = vector.load %arg20[%c0_35, %c8_36, %c0_37] : memref<2x32x128xbf16, #tpu.memory_space<vmem>>, vector<1x16x128xbf16>
    %54 = vector.shape_cast %53 : vector<1x16x128xbf16> to vector<16x128xbf16>
    %c0_38 = arith.constant 0 : index
    %c9 = arith.constant 9 : index
    %c0_39 = arith.constant 0 : index
    %55 = vector.load %arg20[%c0_38, %c9, %c0_39] : memref<2x32x128xbf16, #tpu.memory_space<vmem>>, vector<1x16x128xbf16>
    %56 = vector.shape_cast %55 : vector<1x16x128xbf16> to vector<16x128xbf16>
    %c0_40 = arith.constant 0 : index
    %c10 = arith.constant 10 : index
    %c0_41 = arith.constant 0 : index
    %57 = vector.load %arg20[%c0_40, %c10, %c0_41] : memref<2x32x128xbf16, #tpu.memory_space<vmem>>, vector<1x16x128xbf16>
    %58 = vector.shape_cast %57 : vector<1x16x128xbf16> to vector<16x128xbf16>
    %59 = tpu.concatenate %50, %52, %54, %56, %58 in 1 : vector<16x128xbf16>, vector<16x128xbf16>, vector<16x128xbf16>, vector<16x128xbf16>, vector<16x128xbf16> -> vector<16x640xbf16>
    %c1_42 = arith.constant 1 : index
    %c6_43 = arith.constant 6 : index
    %c0_44 = arith.constant 0 : index
    %60 = vector.load %arg20[%c1_42, %c6_43, %c0_44] : memref<2x32x128xbf16, #tpu.memory_space<vmem>>, vector<1x16x128xbf16>
    %61 = vector.shape_cast %60 : vector<1x16x128xbf16> to vector<16x128xbf16>
    %c1_45 = arith.constant 1 : index
    %c7_46 = arith.constant 7 : index
    %c0_47 = arith.constant 0 : index
    %62 = vector.load %arg20[%c1_45, %c7_46, %c0_47] : memref<2x32x128xbf16, #tpu.memory_space<vmem>>, vector<1x16x128xbf16>
    %63 = vector.shape_cast %62 : vector<1x16x128xbf16> to vector<16x128xbf16>
    %c1_48 = arith.constant 1 : index
    %c8_49 = arith.constant 8 : index
    %c0_50 = arith.constant 0 : index
    %64 = vector.load %arg20[%c1_48, %c8_49, %c0_50] : memref<2x32x128xbf16, #tpu.memory_space<vmem>>, vector<1x16x128xbf16>
    %65 = vector.shape_cast %64 : vector<1x16x128xbf16> to vector<16x128xbf16>
    %c1_51 = arith.constant 1 : index
    %c9_52 = arith.constant 9 : index
    %c0_53 = arith.constant 0 : index
    %66 = vector.load %arg20[%c1_51, %c9_52, %c0_53] : memref<2x32x128xbf16, #tpu.memory_space<vmem>>, vector<1x16x128xbf16>
    %67 = vector.shape_cast %66 : vector<1x16x128xbf16> to vector<16x128xbf16>
    %c1_54 = arith.constant 1 : index
    %c10_55 = arith.constant 10 : index
    %c0_56 = arith.constant 0 : index
    %68 = vector.load %arg20[%c1_54, %c10_55, %c0_56] : memref<2x32x128xbf16, #tpu.memory_space<vmem>>, vector<1x16x128xbf16>
    %69 = vector.shape_cast %68 : vector<1x16x128xbf16> to vector<16x128xbf16>
    %70 = tpu.concatenate %61, %63, %65, %67, %69 in 1 : vector<16x128xbf16>, vector<16x128xbf16>, vector<16x128xbf16>, vector<16x128xbf16>, vector<16x128xbf16> -> vector<16x640xbf16>
    %71 = tpu.concatenate %59, %70 in 0 : vector<16x640xbf16>, vector<16x640xbf16> -> vector<32x640xbf16>
    %c0_57 = arith.constant 0 : index
    %c0_58 = arith.constant 0 : index
    %72 = vector.load %arg5[%c0_57, %c0_58] : memref<640x256xbf16, #tpu.memory_space<vmem>>, vector<640x256xbf16>
    %cst_59 = arith.constant dense<0.000000e+00> : vector<32x256xf32>
    %73 = tpu.matmul %71, %72, %cst_59 {dimension_numbers = #tpu.dot_dimension_numbers<[1], [0], [0], [1], [0, 0, 1, 1], [], []>} : vector<32x640xbf16>, vector<640x256xbf16>, vector<32x256xf32> -> vector<32x256xf32>
    %c0_60 = arith.constant 0 : index
    %c0_61 = arith.constant 0 : index
    %74 = vector.load %arg8[%c0_60, %c0_61] : memref<1x32xf32, #tpu.memory_space<vmem>>, vector<1x32xf32>
    %cst_62 = arith.constant dense<0.000000e+00> : vector<1x256xf32>
    %75 = tpu.matmul %74, %73, %cst_62 {dimension_numbers = #tpu.dot_dimension_numbers<[1], [0], [0], [1], [0, 0, 1, 1], [], []>} : vector<1x32xf32>, vector<32x256xf32>, vector<1x256xf32> -> vector<1x256xf32>
    %c0_63 = arith.constant 0 : index
    %c0_64 = arith.constant 0 : index
    %76 = vector.load %arg8[%c0_63, %c0_64] : memref<1x32xf32, #tpu.memory_space<vmem>>, vector<1x32xf32>
    %77 = arith.mulf %73, %73 : vector<32x256xf32>
    %cst_65 = arith.constant dense<0.000000e+00> : vector<1x256xf32>
    %78 = tpu.matmul %76, %77, %cst_65 {dimension_numbers = #tpu.dot_dimension_numbers<[1], [0], [0], [1], [0, 0, 1, 1], [], []>} : vector<1x32xf32>, vector<32x256xf32>, vector<1x256xf32> -> vector<1x256xf32>
    %cst_66 = arith.constant 0.0357142873 : f32
    %79 = vector.broadcast %cst_66 : f32 to vector<1x256xf32>
    %80 = arith.mulf %75, %79 : vector<1x256xf32>
    %cst_67 = arith.constant 0.0357142873 : f32
    %81 = vector.broadcast %cst_67 : f32 to vector<1x256xf32>
    %82 = arith.mulf %78, %81 : vector<1x256xf32>
    %83 = arith.mulf %80, %80 : vector<1x256xf32>
    %84 = arith.subf %82, %83 : vector<1x256xf32>
    %cst_68 = arith.constant 0.000000e+00 : f32
    %85 = vector.broadcast %cst_68 : f32 to vector<1x256xf32>
    %86 = arith.maximumf %84, %85 : vector<1x256xf32>
    %cst_69 = arith.constant 9.99999974E-6 : f32
    %87 = vector.broadcast %cst_69 : f32 to vector<1x256xf32>
    %88 = arith.addf %86, %87 : vector<1x256xf32>
    %89 = math.rsqrt %88 : vector<1x256xf32>
    %c0_70 = arith.constant 0 : index
    %c0_71 = arith.constant 0 : index
    %90 = vector.load %arg6[%c0_70, %c0_71] : memref<1x256xf32, #tpu.memory_space<vmem>>, vector<1x256xf32>
    %91 = arith.mulf %89, %90 : vector<1x256xf32>
    %c0_72 = arith.constant 0 : index
    %c0_73 = arith.constant 0 : index
    %92 = vector.load %arg7[%c0_72, %c0_73] : memref<1x256xf32, #tpu.memory_space<vmem>>, vector<1x256xf32>
    %93 = arith.mulf %80, %91 : vector<1x256xf32>
    %94 = arith.subf %92, %93 : vector<1x256xf32>
    %95 = vector.broadcast %91 : vector<1x256xf32> to vector<32x256xf32>
    %96 = arith.mulf %73, %95 : vector<32x256xf32>
    %97 = vector.broadcast %94 : vector<1x256xf32> to vector<32x256xf32>
    %98 = arith.addf %96, %97 : vector<32x256xf32>
    %cst_74 = arith.constant 5.000000e-01 : f32
    %99 = vector.broadcast %cst_74 : f32 to vector<32x256xf32>
    %100 = arith.mulf %99, %98 : vector<32x256xf32>
    %101 = math.tanh %100 : vector<32x256xf32>
    %cst_75 = arith.constant 5.000000e-01 : f32
    %102 = vector.broadcast %cst_75 : f32 to vector<32x256xf32>
    %103 = arith.mulf %102, %101 : vector<32x256xf32>
    %cst_76 = arith.constant 5.000000e-01 : f32
    %104 = vector.broadcast %cst_76 : f32 to vector<32x256xf32>
    %105 = arith.addf %103, %104 : vector<32x256xf32>
    %cst_77 = arith.constant 0.000000e+00 : bf16
    %106 = vector.broadcast %cst_77 : bf16 to vector<2x8x256xbf16>
    %c0_78 = arith.constant 0 : index
    %c0_79 = arith.constant 0 : index
    %c0_80 = arith.constant 0 : index
    %107 = vector.load %arg21[%c0_78, %c0_79, %c0_80] : memref<2x24x256xbf16, #tpu.memory_space<vmem>>, vector<2x8x256xbf16>
    tpu.vector_store %arg21[%c0_78, %c0_79, %c0_80], %106 {strides = array<i32>} : memref<2x24x256xbf16, #tpu.memory_space<vmem>>, vector<2x8x256xbf16>,
    %108 = vector.extract_strided_slice %105 {offsets = [0, 0], sizes = [16, 256], strides = [1, 1]} : vector<32x256xf32> to vector<16x256xf32>
    %109 = arith.truncf %108 : vector<16x256xf32> to vector<16x256xbf16>
    %c0_81 = arith.constant 0 : index
    %c8_82 = arith.constant 8 : index
    %c0_83 = arith.constant 0 : index
    %110 = vector.load %arg21[%c0_81, %c8_82, %c0_83] : memref<2x24x256xbf16, #tpu.memory_space<vmem>>, vector<1x16x256xbf16>
    %111 = vector.shape_cast %110 : vector<1x16x256xbf16> to vector<16x256xbf16>
    %112 = vector.shape_cast %109 : vector<16x256xbf16> to vector<1x16x256xbf16>
    tpu.vector_store %arg21[%c0_81, %c8_82, %c0_83], %112 {strides = array<i32>} : memref<2x24x256xbf16, #tpu.memory_space<vmem>>, vector<1x16x256xbf16>,
    %113 = vector.extract_strided_slice %105 {offsets = [16, 0], sizes = [16, 256], strides = [1, 1]} : vector<32x256xf32> to vector<16x256xf32>
    %114 = arith.truncf %113 : vector<16x256xf32> to vector<16x256xbf16>
    %c1_84 = arith.constant 1 : index
    %c8_85 = arith.constant 8 : index
    %c0_86 = arith.constant 0 : index
    %115 = vector.load %arg21[%c1_84, %c8_85, %c0_86] : memref<2x24x256xbf16, #tpu.memory_space<vmem>>, vector<1x16x256xbf16>
    %116 = vector.shape_cast %115 : vector<1x16x256xbf16> to vector<16x256xbf16>
    %117 = vector.shape_cast %114 : vector<16x256xbf16> to vector<1x16x256xbf16>
    tpu.vector_store %arg21[%c1_84, %c8_85, %c0_86], %117 {strides = array<i32>} : memref<2x24x256xbf16, #tpu.memory_space<vmem>>, vector<1x16x256xbf16>,
    %cst_87 = arith.constant 0.000000e+00 : bf16
    %118 = vector.broadcast %cst_87 : bf16 to vector<2x2x256xbf16>
    %c0_88 = arith.constant 0 : index
    %c22_89 = arith.constant 22 : index
    %c0_90 = arith.constant 0 : index
    %119 = vector.load %arg21[%c0_88, %c22_89, %c0_90] : memref<2x24x256xbf16, #tpu.memory_space<vmem>>, vector<2x2x256xbf16>
    tpu.vector_store %arg21[%c0_88, %c22_89, %c0_90], %118 {strides = array<i32>} : memref<2x24x256xbf16, #tpu.memory_space<vmem>>, vector<2x2x256xbf16>,
    %c0_91 = arith.constant 0 : index
    %c6_92 = arith.constant 6 : index
    %c0_93 = arith.constant 0 : index
    %120 = vector.load %arg21[%c0_91, %c6_92, %c0_93] : memref<2x24x256xbf16, #tpu.memory_space<vmem>>, vector<1x16x256xbf16>
    %121 = vector.shape_cast %120 : vector<1x16x256xbf16> to vector<16x256xbf16>
    %c0_94 = arith.constant 0 : index
    %c7_95 = arith.constant 7 : index
    %c0_96 = arith.constant 0 : index
    %122 = vector.load %arg21[%c0_94, %c7_95, %c0_96] : memref<2x24x256xbf16, #tpu.memory_space<vmem>>, vector<1x16x256xbf16>
    %123 = vector.shape_cast %122 : vector<1x16x256xbf16> to vector<16x256xbf16>
    %c0_97 = arith.constant 0 : index
    %c8_98 = arith.constant 8 : index
    %c0_99 = arith.constant 0 : index
    %124 = vector.load %arg21[%c0_97, %c8_98, %c0_99] : memref<2x24x256xbf16, #tpu.memory_space<vmem>>, vector<1x16x256xbf16>
    %125 = vector.shape_cast %124 : vector<1x16x256xbf16> to vector<16x256xbf16>
    %126 = tpu.concatenate %121, %123, %125 in 1 : vector<16x256xbf16>, vector<16x256xbf16>, vector<16x256xbf16> -> vector<16x768xbf16>
    %c1_100 = arith.constant 1 : index
    %c6_101 = arith.constant 6 : index
    %c0_102 = arith.constant 0 : index
    %127 = vector.load %arg21[%c1_100, %c6_101, %c0_102] : memref<2x24x256xbf16, #tpu.memory_space<vmem>>, vector<1x16x256xbf16>
    %128 = vector.shape_cast %127 : vector<1x16x256xbf16> to vector<16x256xbf16>
    %c1_103 = arith.constant 1 : index
    %c7_104 = arith.constant 7 : index
    %c0_105 = arith.constant 0 : index
    %129 = vector.load %arg21[%c1_103, %c7_104, %c0_105] : memref<2x24x256xbf16, #tpu.memory_space<vmem>>, vector<1x16x256xbf16>
    %130 = vector.shape_cast %129 : vector<1x16x256xbf16> to vector<16x256xbf16>
    %c1_106 = arith.constant 1 : index
    %c8_107 = arith.constant 8 : index
    %c0_108 = arith.constant 0 : index
    %131 = vector.load %arg21[%c1_106, %c8_107, %c0_108] : memref<2x24x256xbf16, #tpu.memory_space<vmem>>, vector<1x16x256xbf16>
    %132 = vector.shape_cast %131 : vector<1x16x256xbf16> to vector<16x256xbf16>
    %133 = tpu.concatenate %128, %130, %132 in 1 : vector<16x256xbf16>, vector<16x256xbf16>, vector<16x256xbf16> -> vector<16x768xbf16>
    %134 = tpu.concatenate %126, %133 in 0 : vector<16x768xbf16>, vector<16x768xbf16> -> vector<32x768xbf16>
    %c0_109 = arith.constant 0 : index
    %c0_110 = arith.constant 0 : index
    %135 = vector.load %arg9[%c0_109, %c0_110] : memref<768x128xbf16, #tpu.memory_space<vmem>>, vector<768x128xbf16>
    %cst_111 = arith.constant dense<0.000000e+00> : vector<32x128xf32>
    %136 = tpu.matmul %134, %135, %cst_111 {dimension_numbers = #tpu.dot_dimension_numbers<[1], [0], [0], [1], [0, 0, 1, 1], [], []>} : vector<32x768xbf16>, vector<768x128xbf16>, vector<32x128xf32> -> vector<32x128xf32>
    %c0_112 = arith.constant 0 : index
    %c0_113 = arith.constant 0 : index
    %137 = vector.load %arg12[%c0_112, %c0_113] : memref<1x32xf32, #tpu.memory_space<vmem>>, vector<1x32xf32>
    %cst_114 = arith.constant dense<0.000000e+00> : vector<1x128xf32>
    %138 = tpu.matmul %137, %136, %cst_114 {dimension_numbers = #tpu.dot_dimension_numbers<[1], [0], [0], [1], [0, 0, 1, 1], [], []>} : vector<1x32xf32>, vector<32x128xf32>, vector<1x128xf32> -> vector<1x128xf32>
    %c0_115 = arith.constant 0 : index
    %c0_116 = arith.constant 0 : index
    %139 = vector.load %arg12[%c0_115, %c0_116] : memref<1x32xf32, #tpu.memory_space<vmem>>, vector<1x32xf32>
    %140 = arith.mulf %136, %136 : vector<32x128xf32>
    %cst_117 = arith.constant dense<0.000000e+00> : vector<1x128xf32>
    %141 = tpu.matmul %139, %140, %cst_117 {dimension_numbers = #tpu.dot_dimension_numbers<[1], [0], [0], [1], [0, 0, 1, 1], [], []>} : vector<1x32xf32>, vector<32x128xf32>, vector<1x128xf32> -> vector<1x128xf32>
    %cst_118 = arith.constant 3.125000e-02 : f32
    %142 = vector.broadcast %cst_118 : f32 to vector<1x128xf32>
    %143 = arith.mulf %138, %142 : vector<1x128xf32>
    %cst_119 = arith.constant 3.125000e-02 : f32
    %144 = vector.broadcast %cst_119 : f32 to vector<1x128xf32>
    %145 = arith.mulf %141, %144 : vector<1x128xf32>
    %146 = arith.mulf %143, %143 : vector<1x128xf32>
    %147 = arith.subf %145, %146 : vector<1x128xf32>
    %cst_120 = arith.constant 0.000000e+00 : f32
    %148 = vector.broadcast %cst_120 : f32 to vector<1x128xf32>
    %149 = arith.maximumf %147, %148 : vector<1x128xf32>
    %cst_121 = arith.constant 9.99999974E-6 : f32
    %150 = vector.broadcast %cst_121 : f32 to vector<1x128xf32>
    %151 = arith.addf %149, %150 : vector<1x128xf32>
    %152 = math.rsqrt %151 : vector<1x128xf32>
    %c0_122 = arith.constant 0 : index
    %c0_123 = arith.constant 0 : index
    %153 = vector.load %arg10[%c0_122, %c0_123] : memref<1x128xf32, #tpu.memory_space<vmem>>, vector<1x128xf32>
    %154 = arith.mulf %152, %153 : vector<1x128xf32>
    %c0_124 = arith.constant 0 : index
    %c0_125 = arith.constant 0 : index
    %155 = vector.load %arg11[%c0_124, %c0_125] : memref<1x128xf32, #tpu.memory_space<vmem>>, vector<1x128xf32>
    %156 = arith.mulf %143, %154 : vector<1x128xf32>
    %157 = arith.subf %155, %156 : vector<1x128xf32>
    %158 = vector.broadcast %154 : vector<1x128xf32> to vector<32x128xf32>
    %159 = arith.mulf %136, %158 : vector<32x128xf32>
    %160 = vector.broadcast %157 : vector<1x128xf32> to vector<32x128xf32>
    %161 = arith.addf %159, %160 : vector<32x128xf32>
    %cst_126 = arith.constant 5.000000e-01 : f32
    %162 = vector.broadcast %cst_126 : f32 to vector<32x128xf32>
    %163 = arith.mulf %162, %161 : vector<32x128xf32>
    %164 = math.tanh %163 : vector<32x128xf32>
    %cst_127 = arith.constant 5.000000e-01 : f32
    %165 = vector.broadcast %cst_127 : f32 to vector<32x128xf32>
    %166 = arith.mulf %165, %164 : vector<32x128xf32>
    %cst_128 = arith.constant 5.000000e-01 : f32
    %167 = vector.broadcast %cst_128 : f32 to vector<32x128xf32>
    %168 = arith.addf %166, %167 : vector<32x128xf32>
    %c0_129 = arith.constant 0 : index
    %c0_130 = arith.constant 0 : index
    %169 = vector.load %arg13[%c0_129, %c0_130] : memref<2x32xf32, #tpu.memory_space<vmem>>, vector<2x32xf32>
    %cst_131 = arith.constant dense<0.000000e+00> : vector<2x128xf32>
    %170 = tpu.matmul %169, %168, %cst_131 {dimension_numbers = #tpu.dot_dimension_numbers<[1], [0], [0], [1], [0, 0, 1, 1], [], []>} : vector<2x32xf32>, vector<32x128xf32>, vector<2x128xf32> -> vector<2x128xf32>
    %c0_132 = arith.constant 0 : index
    %c0_133 = arith.constant 0 : index
    %171 = vector.load %arg14[%c0_132, %c0_133] : memref<128x128xf32, #tpu.memory_space<vmem>>, vector<128x128xf32>
    %cst_134 = arith.constant dense<0.000000e+00> : vector<2x128xf32>
    %172 = tpu.matmul %170, %171, %cst_134 {dimension_numbers = #tpu.dot_dimension_numbers<[1], [0], [0], [1], [0, 0, 1, 1], [], []>} : vector<2x128xf32>, vector<128x128xf32>, vector<2x128xf32> -> vector<2x128xf32>
    %c0_135 = arith.constant 0 : index
    %c0_136 = arith.constant 0 : index
    %173 = vector.load %arg15[%c0_135, %c0_136] : memref<1x128xf32, #tpu.memory_space<vmem>>, vector<1x128xf32>
    %174 = vector.broadcast %173 : vector<1x128xf32> to vector<2x128xf32>
    %175 = arith.addf %172, %174 : vector<2x128xf32>
    %c0_137 = arith.constant 0 : index
    %c0_138 = arith.constant 0 : index
    %176 = vector.load %arg16[%c0_137, %c0_138] : memref<2x128xf32, #tpu.memory_space<vmem>>, vector<2x128xf32>
    %177 = arith.mulf %175, %176 : vector<2x128xf32>
    %c0_139 = arith.constant 0 : index
    %c0_140 = arith.constant 0 : index
    %178 = vector.load %arg17[%c0_139, %c0_140] : memref<128x128xf32, #tpu.memory_space<vmem>>, vector<128x128xf32>
    %cst_141 = arith.constant dense<0.000000e+00> : vector<2x128xf32>
    %179 = tpu.matmul %177, %178, %cst_141 {dimension_numbers = #tpu.dot_dimension_numbers<[1], [0], [0], [1], [0, 0, 1, 1], [], []>} : vector<2x128xf32>, vector<128x128xf32>, vector<2x128xf32> -> vector<2x128xf32>
    %c0_142 = arith.constant 0 : index
    %c0_143 = arith.constant 0 : index
    %180 = vector.load %arg18[%c0_142, %c0_143] : memref<1x128xf32, #tpu.memory_space<vmem>>, vector<1x128xf32>
    %181 = vector.broadcast %180 : vector<1x128xf32> to vector<2x128xf32>
    %182 = arith.addf %179, %181 : vector<2x128xf32>
    %c0_144 = arith.constant 0 : index
    %c0_145 = arith.constant 0 : index
    %183 = vector.load %arg19[%c0_144, %c0_145] : memref<2x128xf32, #tpu.memory_space<vmem>>, vector<2x128xf32>
    tpu.vector_store %arg19[%c0_144, %c0_145], %182 {strides = array<i32>} : memref<2x128xf32, #tpu.memory_space<vmem>>, vector<2x128xf32>,
    return
  }
}

</mosaic_0001>

<bundles_post_ra>
// kernel: tpu_custom_call.1
= control target key start
LH: loop header
LB: loop body
LE: loop exit
PB: predicated region body
PF: predicated region fallthrough
CT: control target
= control target key end

     0   :  { %s4051_s0 = inlined_call_operand.vmem [shape: bf16[32,7], index: 0, kind: input, shape index: {}]   ;;  %s4052_s1 = inlined_call_operand.vmem [shape: bf16[7,128], index: 1, kind: input, shape index: {}]   ;;  %s4053_s2 = inlined_call_operand.vmem [shape: f32[1,128], index: 2, kind: input, shape index: {}]   ;;  %s4054_s3 = inlined_call_operand.vmem [shape: f32[1,128], index: 3, kind: input, shape index: {}]   ;;  %s4055_s4 = inlined_call_operand.vmem [shape: f32[1,32], index: 4, kind: input, shape index: {}]   ;;  %s4056_s5 = inlined_call_operand.hbm [shape: bf16[640,256], index: 5, kind: input, shape index: {}]   ;;  %s4057_s6 = inlined_call_operand.vmem [shape: f32[1,256], index: 6, kind: input, shape index: {}]   ;;  %s4058_s7 = inlined_call_operand.vmem [shape: f32[1,256], index: 7, kind: input, shape index: {}]   ;;  %s4059_s8 = inlined_call_operand.vmem [shape: f32[1,32], index: 8, kind: input, shape index: {}]   ;;  %s4060_s9 = inlined_call_operand.hbm [shape: bf16[768,128], index: 9, kind: input, shape index: {}]   ;;  %s4061_s10 = inlined_call_operand.vmem [shape: f32[1,128], index: 10, kind: input, shape index: {}]   ;;  %s4062_s11 = inlined_call_operand.vmem [shape: f32[1,128], index: 11, kind: input, shape index: {}]   ;;  %s4063_s12 = inlined_call_operand.vmem [shape: f32[1,32], index: 12, kind: input, shape index: {}]   ;;  %s4064_s13 = inlined_call_operand.vmem [shape: f32[2,32], index: 13, kind: input, shape index: {}]   ;;  %s4065_s14 = inlined_call_operand.hbm [shape: f32[128,128], index: 14, kind: input, shape index: {}]   ;;  %s4066_s15 = inlined_call_operand.vmem [shape: f32[1,128], index: 15, kind: input, shape index: {}]   ;;  %s4067_s16 = inlined_call_operand.vmem [shape: f32[2,128], index: 16, kind: input, shape index: {}]   ;;  %s4068_s17 = inlined_call_operand.hbm [shape: f32[128,128], index: 17, kind: input, shape index: {}]   ;;  %s4069_s18 = inlined_call_operand.vmem [shape: f32[1,128], index: 18, kind: input, shape index: {}]   ;;  %s4070_s19 = inlined_call_operand.hbm [shape: f32[2,128], index: 19, kind: output, shape index: {}]  }
   0x1   :  { %4072 = sst [smem:[#allocation17_spill]] %s4051_s0 }
   0x2   :  { %4073 = sst [smem:[#allocation18_spill]] %s4052_s1 }
   0x3   :  { %4074 = sst [smem:[#allocation19_spill]] %s4053_s2 }
   0x4   :  { %4075 = sst [smem:[#allocation20_spill]] %s4054_s3 }
   0x5   :  { %24 = vsyncpa [#allocation5], 0 }
   0x6   :  { %25 = vsyncpa [#allocation8], 0 }
   0x7   :  { %26 = vsyncpa [#allocation11], 0 }
   0x8   :  { %27 = vsyncpa [#allocation6], 0  ;;  %s3565_s0 = smov [#allocation7]   ;;  %s3447_s1 = scalar_lea.hbm %s4060_s9, 6144 }
   0x9   :  { %s61_s30 = sshll.u32 %s3565_s0, 4  ;;  %p3448_p0 = scmp.ne.s32.totalorder %s4060_s9, %s3447_s1  ;;  %s62_s30 = int_to_ptr.vmem [resolvable:$true] %s61_s30 }
   0xa   :  { %p3451_p1 = scmp.lt.u32.totalorder %s3447_s1, %s4060_s9 }
   0xc   :  { %p3453_p2 = pnand %p3451_p1, %p3448_p0 }
   0xe   :  { %3456 = shalt.err (!%p3453_p2)
}
   0xf   :  { %s3457_s25 = scalar_lea.vmem %s62_s30, 6144  ;;  %p3462_p4 = scmp.lt.s32.totalorder %s62_s30, %s62_s30 }
  0x10   :  { %p3458_p3 = scmp.ne.s32.totalorder %s62_s30, %s3457_s25  ;;  %p3463_p5 = scmp.lt.s32.totalorder %s3457_s25, %s3457_s25 }
  0x12   :  { %p3464_p6 = por %p3463_p5, %p3462_p4 }
  0x14   :  { %p3465_p7 = pnand %p3464_p6, %p3458_p3 }
  0x16   :  { %3468 = shalt.err (!%p3465_p7)
}
  0x17   :  { %s3566_s3 = smov 64   ;;  %s3567_s26 = smov 4  }
  0x18   :  { %67 = dma.hbm_to_vmem [thread:$0]  %s4060_s9, 6144, %s62_s30, [#allocation8], %s3566_s3, %s3566_s3, %s3567_s26  }
  0x19   :  { %s3568_s29 = smov [#allocation4]   ;;  %s3469_s1 = scalar_lea.hbm %s4056_s5, 10240 }
  0x1a   :  { %s43_s0 = sshll.u32 %s3568_s29, 4  ;;  %p3470_p8 = scmp.ne.s32.totalorder %s4056_s5, %s3469_s1  ;;  %s44_s0 = int_to_ptr.vmem [resolvable:$true] %s43_s0 }
  0x1b   :  { %p3473_p9 = scmp.lt.u32.totalorder %s3469_s1, %s4056_s5 }
  0x1d   :  { %p3475_p10 = pnand %p3473_p9, %p3470_p8 }
  0x1f   :  { %3478 = shalt.err (!%p3475_p10)
}
  0x20   :  { %s3479_s25 = scalar_lea.vmem %s44_s0, 10240  ;;  %p3484_p12 = scmp.lt.s32.totalorder %s44_s0, %s44_s0 }
  0x21   :  { %p3480_p11 = scmp.ne.s32.totalorder %s44_s0, %s3479_s25  ;;  %p3485_p13 = scmp.lt.s32.totalorder %s3479_s25, %s3479_s25 }
  0x23   :  { %p3486_p0 = por %p3485_p13, %p3484_p12 }
  0x25   :  { %p3487_p1 = pnand %p3486_p0, %p3480_p11 }
  0x27   :  { %3490 = shalt.err (!%p3487_p1)
}
  0x28   :  { %s3569_s9 = smov 128   ;;  %s3570_s30 = smov 8  }
  0x29   :  { %49 = dma.hbm_to_vmem [thread:$0]  %s4056_s5, 10240, %s44_s0, [#allocation5], %s3569_s9, %s3569_s9, %s3570_s30  }
  0x2a   :  { %s3571_s27 = smov [#allocation9]   ;;  %s3572_s29 = smov [#allocation10]  }
  0x2b   :  { %s81_s28 = sshll.u32 %s3571_s27, 4  ;;  %s97_s20 = sshll.u32 %s3572_s29, 4  ;;  %s82_s28 = int_to_ptr.vmem [resolvable:$true] %s81_s28  ;;  %s3707_s20 = int_to_ptr.vmem [resolvable:$true] %s97_s20 }
  0x2c   :  { %s3491_s22 = scalar_lea.hbm %s4065_s14, 2048 }
  0x2d   :  { %p3492_p2 = scmp.ne.s32.totalorder %s4065_s14, %s3491_s22  ;;  %p3495_p3 = scmp.lt.u32.totalorder %s3491_s22, %s4065_s14 }
  0x2f   :  { %p3497_p4 = pnand %p3495_p3, %p3492_p2 }
  0x31   :  { %3500 = shalt.err (!%p3497_p4)
}
  0x32   :  { %s3501_s5 = scalar_lea.vmem %s82_s28, 2048  ;;  %p3506_p6 = scmp.lt.s32.totalorder %s82_s28, %s82_s28 }
  0x33   :  { %p3502_p5 = scmp.ne.s32.totalorder %s82_s28, %s3501_s5  ;;  %p3507_p7 = scmp.lt.s32.totalorder %s3501_s5, %s3501_s5 }
  0x35   :  { %p3508_p8 = por %p3507_p7, %p3506_p6 }
  0x37   :  { %p3509_p9 = pnand %p3508_p8, %p3502_p5 }
  0x39   :  { %3512 = shalt.err (!%p3509_p9)
}
  0x3a   :  { %87 = dma.hbm_to_vmem [thread:$0]  %s4065_s14, 2048, %s82_s28, [#allocation8], %s3569_s9, %s3569_s9, %s3570_s30  }
  0x3b   :  { %s3513_s29 = scalar_lea.hbm %s4068_s17, 2048 }
  0x3c   :  { %p3514_p10 = scmp.ne.s32.totalorder %s4068_s17, %s3513_s29  ;;  %p3517_p11 = scmp.lt.u32.totalorder %s3513_s29, %s4068_s17 }
  0x3e   :  { %p3519_p12 = pnand %p3517_p11, %p3514_p10 }
  0x40   :  { %3522 = shalt.err (!%p3519_p12)
}
  0x41   :  { %s3523_s23 = scalar_lea.vmem %s3707_s20, 2048  ;;  %p3528_p0 = scmp.lt.s32.totalorder %s3707_s20, %s3707_s20 }
  0x42   :  { %p3524_p13 = scmp.ne.s32.totalorder %s3707_s20, %s3523_s23  ;;  %p3529_p1 = scmp.lt.s32.totalorder %s3523_s23, %s3523_s23 }
  0x44   :  { %p3530_p2 = por %p3529_p1, %p3528_p0 }
  0x46   :  { %p3531_p3 = pnand %p3530_p2, %p3524_p13 }
  0x48   :  { %3534 = shalt.err (!%p3531_p3)
}
  0x49   :  { %103 = dma.hbm_to_vmem [thread:$0]  %s4068_s17, 2048, %s3707_s20, [#allocation11], %s3569_s9, %s3569_s9, %s3570_s30  }
  0x4a   :  { %3557 = dma.done.wait [#allocation5], 10240  }
  0x4b   :  { %3558 = vsyncadd [#allocation5], 4294957056 }
  0x4c   :  { %3559 = dma.done.wait [#allocation8], 8192  }
  0x4d   :  { %3560 = vsyncadd [#allocation8], 4294959104 }
  0x4e   :  { %3561 = dma.done.wait [#allocation11], 2048  }
  0x4f   :  { %3562 = vsyncadd [#allocation11], 4294965248  ;;  %vm141_vm0 = vcmask 1042432   ;;  %vm142_vm1 = vcmask 1043456   ;;  %v3573_v0 = vmov 65535   ;;  %vm134_vm2 = vcmask 56320  }
  0x50   :  { %v143_v1 = vsel %vm141_vm0, 4294967295, %v3573_v0  ;;  %s4076_s5 = sld [smem:[#allocation18_spill]]  ;;  %s4077_s17 = sld [smem:[#allocation17_spill]]  ;;  %v3574_v7 = vmov 0.0|0.0   ;;  %vm3575_vm3 = vmmov 0   ;;  %v3576_v8 = vmov 0.0  }
  0x51   :  { %v144_v2 = vsel %vm142_vm1, %v143_v1, 0  ;;  %v197_v21 = vld [vmem:[%s4055_s4] sm:$0x1]  ;;  %vm198_vm4 = vcmask 261120   ;;  %v3231_v22 = vld [vmem:[#allocation4 + $0x4] ss:$8 sps:$4 sm:$0xff]  }
  0x52   :  { %v3233_v23 = vld [vmem:[#allocation4] ss:$8 sps:$4 sm:$0xff]   ;;  %1034 = vmatprep.subr.bf16.mxu1 %v3231_v22  ;;  %v3234_v24 = vld [vmem:[#allocation4 + $0x14] ss:$8 sps:$4 sm:$0xff]   ;;  %v3236_v25 = vld [vmem:[#allocation4 + $0x10] ss:$8 sps:$4 sm:$0xff]  }
  0x53   :  { %1035 = vmatpush1.bf16.msra.mxu1 %v3233_v23  ;;  %v3237_v26 = vld [vmem:[#allocation4 + $0x24] ss:$8 sps:$4 sm:$0xff]   ;;  %v3239_v27 = vld [vmem:[#allocation4 + $0x20] ss:$8 sps:$4 sm:$0xff]   ;;  %v3240_v28 = vld [vmem:[#allocation4 + $0x34] ss:$8 sps:$4 sm:$0xff]  }
  0x54   :  { %1036 = vmatprep.subr.bf16.mxu1 %v3234_v24  ;;  %v3242_v29 = vld [vmem:[#allocation4 + $0x30] ss:$8 sps:$4 sm:$0xff]   ;;  %v3243_v30 = vld [vmem:[#allocation4 + $0x44] ss:$8 sps:$4 sm:$0xff]   ;;  %v3245_v31 = vld [vmem:[#allocation4 + $0x40] ss:$8 sps:$4 sm:$0xff]  }
  0x55   :  { %v3246_v32 = vld [vmem:[#allocation4 + $0x54] ss:$8 sps:$4 sm:$0xff]   ;;  %v3248_v33 = vld [vmem:[#allocation4 + $0x50] ss:$8 sps:$4 sm:$0xff]   ;;  %v3249_v34 = vld [vmem:[#allocation4 + $0x64] ss:$8 sps:$4 sm:$0xff]  }
  0x56   :  { %v123_v3 = vld [vmem:[%s4076_s5] sm:$0xf]  ;;  %v3230_v6 = vld [vmem:[%s4077_s17 + $0x8] sm:$0xff]   ;;  %v3251_v35 = vld [vmem:[#allocation4 + $0x60] ss:$8 sps:$4 sm:$0xff]   ;;  %v3577_v44 = vmov 0  }
  0x57   :  { %v146_v4 = vand.u32 %v144_v2, %v123_v3  ;;  %v3229_v5 = vld [vmem:[%s4077_s17] sm:$0xff]   ;;  %1037 = vmatpush1.bf16.msra.mxu1 %v3236_v25  ;;  %v3255_v38 = vld [vmem:[#allocation4 + $0x84] ss:$8 sps:$4 sm:$0xff]   ;;  %v3257_v39 = vld [vmem:[#allocation4 + $0x80] ss:$8 sps:$4 sm:$0xff]   ;;  %1464 = vst [vmem:[#allocation3] sm:$0xff] %v3577_v44  ;;  %v358_v2 = vlaneseq }
  0x58   :  { %2975 = vmatprep.mubr.msk.bf16.mxu0 %vm134_vm2, %v3229_v5  ;;  %1038 = vmatprep.subr.bf16.mxu1 %v3237_v26  ;;  %v3252_v36 = vld [vmem:[#allocation4 + $0x74] ss:$8 sps:$4 sm:$0xff]   ;;  %v3254_v37 = vld [vmem:[#allocation4 + $0x70] ss:$8 sps:$4 sm:$0xff]   ;;  %v3261_v42 = vld [vmem:[#allocation4 + $0xa4] ss:$8 sps:$4 sm:$0xff]  }
  0x59   :  { %2973 = vmatprep.subr.bf16.mxu0 %v146_v4  ;;  %v3258_v40 = vld [vmem:[#allocation4 + $0x94] ss:$8 sps:$4 sm:$0xff]   ;;  %v3260_v41 = vld [vmem:[#allocation4 + $0x90] ss:$8 sps:$4 sm:$0xff]   ;;  %v3263_v43 = vld [vmem:[#allocation4 + $0xa0] ss:$8 sps:$4 sm:$0xff]  }
  0x5a   :  { %2974 = vmatpush3.bf16.msra.mxu0 %v146_v4  ;;  %392 = vst [vmem:[#allocation2] sm:$0xf] %v3577_v44  ;;  %393 = vst [vmem:[#allocation2 + $0x10] sm:$0xf] %v3577_v44  ;;  %v3264_v45 = vld [vmem:[#allocation4 + $0xb4] ss:$8 sps:$4 sm:$0xff]  }
  0x5b   :  { %3104 = vmatprep.subr.bf16.mxu0 %v3574_v7  ;;  %1039 = vmatpush1.bf16.msra.mxu1 %v3239_v27  ;;  %1465 = vst [vmem:[#allocation3 + $0x18] sm:$0xff] %v3577_v44  ;;  %v3266_v46 = vld [vmem:[#allocation4 + $0xb0] ss:$8 sps:$4 sm:$0xff]   ;;  %v3267_v47 = vld [vmem:[#allocation4 + $0xc4] ss:$8 sps:$4 sm:$0xff]   ;;  %v3791_v3 = vshrl.u32 %v358_v2, 7 }
  0x5c   :  { %1040 = vmatprep.subr.bf16.mxu1 %v3240_v28  ;;  %v3269_v48 = vld [vmem:[#allocation4 + $0xc0] ss:$8 sps:$4 sm:$0xff]   ;;  %v3270_v49 = vld [vmem:[#allocation4 + $0xd4] ss:$8 sps:$4 sm:$0xff]   ;;  %v3272_v50 = vld [vmem:[#allocation4 + $0xd0] ss:$8 sps:$4 sm:$0xff]  }
  0x5d   :  { %2976 = vmatmul.mubr.msk.bf16.vlgmr.msra.gmra.mrb[0].mxu0 %vm134_vm2, %v3230_v6  ;;  %v3273_v51 = vld [vmem:[#allocation4 + $0xe4] ss:$8 sps:$4 sm:$0xff]   ;;  %v3275_v52 = vld [vmem:[#allocation4 + $0xe0] ss:$8 sps:$4 sm:$0xff]   ;;  %v3276_v53 = vld [vmem:[#allocation4 + $0xf4] ss:$8 sps:$4 sm:$0xff]  }
  0x5e   :  { %2987 = vmatprep.mubr.msk.f32.mxu0 %vm3575_vm3, %v3576_v8  ;;  %v3278_v54 = vld [vmem:[#allocation4 + $0xf0] ss:$8 sps:$4 sm:$0xff]   ;;  %v3281_v55 = vld [vmem:[#allocation4 + $0x104] ss:$8 sps:$4 sm:$0xff]   ;;  %s4078_s29 = sld [smem:[#allocation19_spill]]  ;;  %v3797_v5 = vsub.s32 0, %v3791_v3 }
  0x5f   :  { %1041 = vmatpush1.bf16.msra.mxu1 %v3242_v29  ;;  %s4079_s22 = sld [smem:[#allocation20_spill]]  ;;  %vm415_vm5 = vsmask.f32 7424  ;;  %vm511_vm6 = vcmask 1044480   ;;  %vm437_vm7 = vsmask.f32 6400 }
  0x60   :  { %1042 = vmatprep.subr.bf16.mxu1 %v3243_v30  ;;  %vm433_vm8 = vcmask 1046528   ;;  %vm457_vm9 = vcmask 1045504   ;;  %s3579_s26 = smov [#allocation12]  }
  0x61   :  { %s2647_s4 = sshll.u32 %s3579_s26, 4  ;;  %s2648_s4 = int_to_ptr.vmem [resolvable:$true] %s2647_s4 }
  0x62   :  { %p3540_p5 = scmp.lt.s32.totalorder %s2648_s4, %s2648_s4 }
  0x63   :  { %1043 = vmatpush1.bf16.msra.mxu1 %v3245_v31 }
  0x64   :  { %1044 = vmatprep.subr.bf16.mxu1 %v3246_v32  ;;  %v353_v4 = vld [vmem:[%s4078_s29] sm:$0x1] }
  0x67   :  { %1045 = vmatpush1.bf16.msra.mxu1 %v3248_v33 }
  0x68   :  { %1046 = vmatprep.subr.bf16.mxu1 %v3249_v34 }
  0x6b   :  { %1047 = vmatpush1.bf16.msra.mxu1 %v3251_v35 }
  0x6c   :  { %1048 = vmatprep.subr.bf16.mxu1 %v3252_v36 }
  0x6f   :  { %1049 = vmatpush1.bf16.msra.mxu1 %v3254_v37 }
  0x70   :  { %1050 = vmatprep.subr.bf16.mxu1 %v3255_v38 }
  0x73   :  { %1051 = vmatpush1.bf16.msra.mxu1 %v3257_v39 }
  0x74   :  { %1052 = vmatprep.subr.bf16.mxu1 %v3258_v40 }
  0x77   :  { %1053 = vmatpush1.bf16.msra.mxu1 %v3260_v41 }
  0x78   :  { %1054 = vmatprep.subr.bf16.mxu1 %v3261_v42 }
  0x7b   :  { %1055 = vmatpush1.bf16.msra.mxu1 %v3263_v43 }
  0x7c   :  { %1056 = vmatprep.subr.bf16.mxu1 %v3264_v45 }
  0x7f   :  { %1057 = vmatpush1.bf16.msra.mxu1 %v3266_v46 }
  0x80   :  { %1058 = vmatprep.subr.bf16.mxu1 %v3267_v47 }
  0x83   :  { %1059 = vmatpush1.bf16.msra.mxu1 %v3269_v48 }
  0x84   :  { %1060 = vmatprep.subr.bf16.mxu1 %v3270_v49 }
  0x87   :  { %1061 = vmatpush1.bf16.msra.mxu1 %v3272_v50 }
  0x88   :  { %1062 = vmatprep.subr.bf16.mxu1 %v3273_v51 }
  0x8b   :  { %1063 = vmatpush1.bf16.msra.mxu1 %v3275_v52 }
  0x8c   :  { %1064 = vmatprep.subr.bf16.mxu1 %v3276_v53 }
  0x8f   :  { %1065 = vmatpush1.bf16.msra.mxu1 %v3278_v54 }
  0x90   :  { %1087 = vmatprep.subr.bf16.mxu1 %v3281_v55 }
 0x130   :  { %v3756_v9 = vpop.f32.mrb[0].mxu0 }
 0x131   :  { %v3758_v10 = vpop.f32.mrb[1].mxu0  ;;  %v274_v12 = vmul.f32 %v3756_v9, %v3756_v9 }
 0x132   :  { %v3760_v11 = vpop.f32.mrb[2].mxu0  ;;  %v272_v16 = vmul.f32 %v3758_v10, %v3758_v10 }
 0x133   :  { %v3108_v13 = vpack.c.bf16 %v3760_v11, %v3756_v9  ;;  %v275_v14 = vmul.f32 %v3760_v11, %v3760_v11  ;;  %v3768_v15 = vpop.f32.mrb[3].mxu0 }
 0x134   :  { %v3105_v17 = vpack.c.bf16 %v3768_v15, %v3758_v10  ;;  %v273_v18 = vmul.f32 %v3768_v15, %v3768_v15 }
 0x135   :  { %v3114_v19 = vpack.c.bf16 %v275_v14, %v274_v12 }
 0x136   :  { %v3111_v20 = vpack.c.bf16 %v273_v18, %v272_v16  ;;  %3106 = vmatpush3.bf16.msra.mxu0 %v3105_v17 }
 0x137   :  { %3107 = vmatprep.subr.bf16.mxu0 %v3574_v7 }
 0x13a   :  { %3109 = vmatpush3.bf16.msra.mxu0 %v3108_v13  ;;  %v355_v13 = vld [vmem:[%s4079_s22] sm:$0x1] }
 0x13b   :  { %3110 = vmatprep.subr.bf16.mxu0 %v3574_v7 }
 0x13d   :  { %2988 = vmatmul.mubr.msk.f32.vlgmr.msra.gmra.mrb[4].mxu0 %vm198_vm4, %v197_v21 }
 0x13e   :  { %3112 = vmatpush3.bf16.msra.mxu0 %v3111_v20  ;;  %2998 = vmatprep.mubr.msk.f32.mxu0 %vm3575_vm3, %v3576_v8 }
 0x13f   :  { %3113 = vmatprep.subr.bf16.mxu0 %v3574_v7 }
 0x142   :  { %3115 = vmatpush3.bf16.msra.mxu0 %v3114_v19 }
 0x145   :  { %2999 = vmatmul.mubr.msk.f32.vlgmr.msra.gmra.mrb[6].mxu0 %vm198_vm4, %v197_v21 }
 0x146   :  { %1261 = vmatprep.mubr.f32.mxu0 %v3576_v8 }
 0x210   :  { %v268_v56 = vpop.f32.mrb[4].mxu0 }
 0x211   :  { %v2989_v57 = vpop.f32.mrb[5].mxu0  ;;  %v346_v58 = vmul.f32 0.035714287, %v268_v56 }
 0x213   :  { %v348_v60 = vmul.f32 %v346_v58, %v346_v58 }
 0x218   :  { %v342_v59 = vpop.f32.mrb[6].mxu0 }
 0x219   :  { %v347_v61 = vmul.f32 0.035714287, %v342_v59  ;;  %v3000_v62 = vpop.f32.mrb[7].mxu0 }
 0x21b   :  { %v349_v63 = vsub.f32 %v347_v61, %v348_v60 }
 0x21d   :  { %v350_v0 = vmax.f32 %v349_v63, 0.0 }
 0x21f   :  { %v351_v1 = vadd.f32 1e-05, %v350_v0 }
 0x221   :  { %3407 = vrsqrt.f32 %v351_v1 }
 0x22b   :  { %v3408_v6 = vpop.eup %3407 }
 0x22c   :  { %v354_v12 = vmul.f32 %v3408_v6, %v353_v4 }
 0x22e   :  { %v356_v14 = vmul.f32 %v354_v12, %v346_v58  ;;  %v361_v16 = vrot.slane %v354_v12, %v3797_v5 }
 0x230   :  { %v357_v17 = vsub.f32 %v355_v13, %v356_v14  ;;  %v362_v18 = vmul.f32 %v361_v16, %v3758_v10  ;;  %v363_v19 = vmul.f32 %v361_v16, %v3768_v15  ;;  %v364_v20 = vmul.f32 %v3756_v9, %v361_v16 }
 0x231   :  { %v365_v21 = vmul.f32 %v3760_v11, %v361_v16 }
 0x232   :  { %v370_v22 = vrot.slane %v357_v17, %v3797_v5 }
 0x234   :  { %v372_v23 = vadd.f32 %v370_v22, %v362_v18  ;;  %v373_v24 = vadd.f32 %v370_v22, %v363_v19  ;;  %v374_v25 = vadd.f32 %v370_v22, %v364_v20  ;;  %v375_v26 = vadd.f32 %v370_v22, %v365_v21  ;;  %v3279_v22 = vld [vmem:[#allocation4 + $0x100] ss:$8 sps:$4 sm:$0xff]  }
 0x236   :  { %v376_v27 = vmul.f32 0.5, %v372_v23  ;;  %v377_v28 = vmul.f32 0.5, %v373_v24  ;;  %v378_v29 = vmul.f32 0.5, %v374_v25  ;;  %v379_v30 = vmul.f32 0.5, %v375_v26 }
 0x238   :  { %3409 = vtanh.f32 %v376_v27 }
 0x239   :  { %3411 = vtanh.f32 %v377_v28 }
 0x23a   :  { %3413 = vtanh.f32 %v378_v29  ;;  %v3284_v29 = vld [vmem:[#allocation4 + $0x114] ss:$8 sps:$4 sm:$0xff]  }
 0x23b   :  { %3415 = vtanh.f32 %v379_v30 }
 0x242   :  { %v3410_v10 = vpop.eup %3409 }
 0x243   :  { %v3412_v15 = vpop.eup %3411  ;;  %v384_v31 = vmul.f32 0.5, %v3410_v10 }
 0x244   :  { %v3414_v9 = vpop.eup %3413  ;;  %v385_v32 = vmul.f32 0.5, %v3412_v15 }
 0x245   :  { %v3416_v11 = vpop.eup %3415  ;;  %v386_v33 = vmul.f32 0.5, %v3414_v9  ;;  %v388_v34 = vadd.f32 0.5, %v384_v31 }
 0x246   :  { %v387_v35 = vmul.f32 0.5, %v3416_v11  ;;  %v389_v36 = vadd.f32 0.5, %v385_v32  ;;  %v3282_v32 = vld [vmem:[#allocation4 + $0x110] ss:$8 sps:$4 sm:$0xff]  }
 0x247   :  { %v390_v37 = vadd.f32 0.5, %v386_v33  ;;  %v3287_v33 = vld [vmem:[#allocation4 + $0x124] ss:$8 sps:$4 sm:$0xff]  }
 0x248   :  { %v391_v38 = vadd.f32 0.5, %v387_v35  ;;  %v394_v39 = vpack.c.bf16 %v389_v36, %v388_v34 }
 0x24a   :  { %v396_v40 = vrot.slane %v394_v39, 4  ;;  %v400_v41 = vpack.c.bf16 %v391_v38, %v390_v37  ;;  %v3285_v38 = vld [vmem:[#allocation4 + $0x120] ss:$8 sps:$4 sm:$0xff]   ;;  %v3290_v39 = vld [vmem:[#allocation4 + $0x134] ss:$8 sps:$4 sm:$0xff]  }
 0x24c   :  { %398 = vst [vmem:[#allocation2 + $0x8] ss:$-4 sps:$4 sm:$0xff] %v396_v40   ;;  %v402_v42 = vrot.slane %v400_v41, 4 }
 0x24d   :  { %407 = vst [vmem:[#allocation2 + $0x8] sm:$0xf8] %v3577_v44 }
 0x24e   :  { %405 = vst [vmem:[#allocation2 + $0x18] ss:$-4 sps:$4 sm:$0xff] %v402_v42   ;;  %v3288_v42 = vld [vmem:[#allocation4 + $0x130] ss:$8 sps:$4 sm:$0xff]  }
 0x24f   :  { %408 = vst [vmem:[#allocation2 + $0x18] sm:$0xf8] %v3577_v44 }
 0x253   :  { %v409_v43 = vld [vmem:[#allocation2] sm:$0xf8]  ;;  %v410_v58 = vld [vmem:[#allocation2 + $0x8] sm:$0x7] }
 0x254   :  { %v3810_v45 = vld [vmem:[#allocation2] sm:$0xf0]  ;;  %v3812_v46 = vld [vmem:[#allocation2 + $0x8] sm:$0xf]  ;;  %v419_v47 = vshll.u32 %v409_v43, 16  ;;  %v417_v51 = vshrl.u32 %v409_v43, 16 }
 0x255   :  { %v424_v48 = vshll.u32 %v3812_v46, 16  ;;  %v461_v49 = vld [vmem:[#allocation2 + $0x10] sm:$0xf8]  ;;  %v439_v50 = vshrl.u32 %v3810_v45, 16  ;;  %v512_v53 = vrot.slane %v409_v43, 3  ;;  %v428_v57 = vshrl.u32 %v3812_v46, 16 }
 0x256   :  { %v421_v52 = vrot.slane %v419_v47, 1  ;;  %v3816_v54 = vld [vmem:[#allocation2 + $0x18] sm:$0xf]  ;;  %v470_v55 = vshll.u32 %v461_v49, 16  ;;  %v468_v59 = vshrl.u32 %v461_v49, 16  ;;  %v442_v6 = vshll.u32 %v3810_v45, 16 }
 0x257   :  { %v426_v56 = vrot.slane %v424_v48, 1  ;;  %v475_v60 = vshll.u32 %v3816_v54, 16  ;;  %v479_v63 = vshrl.u32 %v3816_v54, 16  ;;  %v3821_v0 = vld [vmem:[#allocation2 + $0x8] sm:$0x1f]  ;;  %v441_v1 = vrot.slane %v439_v50, 1 }
 0x258   :  { %v422_v61 = vor.u32 %v421_v52, %v417_v51  ;;  %v472_v62 = vrot.slane %v470_v55, 1  ;;  %v447_v12 = vshrl.u32 %v3821_v0, 16  ;;  %v513_v14 = vrot.slane %v410_v58, 3  ;;  %v462_v9 = vld [vmem:[#allocation2 + $0x18] sm:$0x7] }
 0x259   :  { %v430_v2 = vor.u32 %v428_v57, %v426_v56  ;;  %v477_v4 = vrot.slane %v475_v60, 1  ;;  %v450_v17 = vshll.u32 %v3821_v0, 16  ;;  %v444_v21 = vrot.slane %v442_v6, 2  ;;  %v3293_v43 = vld [vmem:[#allocation4 + $0x144] ss:$8 sps:$4 sm:$0xff]  }
 0x25a   :  { %v427_v13 = vsel %vm415_vm5, %v422_v61, %v426_v56  ;;  %v473_v16 = vor.u32 %v472_v62, %v468_v59  ;;  %v449_v24 = vrot.slane %v447_v12, 1  ;;  %v514_v10 = vsel %vm511_vm6, %v512_v53, %v513_v14  ;;  %v3291_v47 = vld [vmem:[#allocation4 + $0x140] ss:$8 sps:$4 sm:$0xff]   ;;  %v3296_v48 = vld [vmem:[#allocation4 + $0x154] ss:$8 sps:$4 sm:$0xff]  }
 0x25b   :  { %v515_v18 = vrot.slane %v427_v13, 3  ;;  %v516_v19 = vrot.slane %v430_v2, 3  ;;  %v481_v20 = vor.u32 %v479_v63, %v477_v4  ;;  %v452_v25 = vrot.slane %v450_v17, 2  ;;  %v3299_v50 = vld [vmem:[#allocation4 + $0x164] ss:$8 sps:$4 sm:$0xff]  }
 0x25c   :  { %v478_v23 = vsel %vm415_vm5, %v473_v16, %v477_v4  ;;  %v445_v30 = vor.u32 %v444_v21, %v441_v1  ;;  %v534_v34 = vrot.slane %v461_v49, 3  ;;  %v535_v35 = vrot.slane %v462_v9, 3  ;;  %v3294_v49 = vld [vmem:[#allocation4 + $0x150] ss:$8 sps:$4 sm:$0xff]   ;;  %v3297_v51 = vld [vmem:[#allocation4 + $0x160] ss:$8 sps:$4 sm:$0xff]  }
 0x25d   :  { %v517_v26 = vsel %vm511_vm6, %v515_v18, %v516_v19  ;;  %v537_v27 = vrot.slane %v478_v23, 3  ;;  %v538_v28 = vrot.slane %v481_v20, 3  ;;  %v453_v15 = vor.u32 %v452_v25, %v449_v24  ;;  %v3302_v52 = vld [vmem:[#allocation4 + $0x174] ss:$8 sps:$4 sm:$0xff]   ;;  %v3300_v53 = vld [vmem:[#allocation4 + $0x170] ss:$8 sps:$4 sm:$0xff]  }
 0x25e   :  { %1066 = vmatprep.mubr.bf16.mxu1 %v517_v26  ;;  %v536_v40 = vsel %vm511_vm6, %v534_v34, %v535_v35  ;;  %v3305_v55 = vld [vmem:[#allocation4 + $0x184] ss:$8 sps:$4 sm:$0xff]   ;;  %v3303_v56 = vld [vmem:[#allocation4 + $0x180] ss:$8 sps:$4 sm:$0xff]   ;;  %v3308_v57 = vld [vmem:[#allocation4 + $0x194] ss:$8 sps:$4 sm:$0xff]  }
 0x25f   :  { %1067 = vmatmul.mubr.bf16.vlgmr.msra.gmra.mrb[0].mxu1 %v514_v10  ;;  %v539_v31 = vsel %vm511_vm6, %v537_v27, %v538_v28  ;;  %v454_v11 = vsel %vm437_vm7, %v445_v30, %v453_v15  ;;  %v522_v37 = vrot.slane %v453_v15, 3  ;;  %v3306_v58 = vld [vmem:[#allocation4 + $0x190] ss:$8 sps:$4 sm:$0xff]   ;;  %v3311_v59 = vld [vmem:[#allocation4 + $0x1a4] ss:$8 sps:$4 sm:$0xff]   ;;  %v435_v23 = vrot.slane %v3812_v46, 1 }
 0x260   :  { %1088 = vmatpush1.bf16.msra.mxu1 %v3279_v22  ;;  %1076 = vmatprep.mubr.bf16.mxu1 %v539_v31  ;;  %v521_v36 = vrot.slane %v454_v11, 3  ;;  %v3309_v60 = vld [vmem:[#allocation4 + $0x1a0] ss:$8 sps:$4 sm:$0xff]   ;;  %v3314_v61 = vld [vmem:[#allocation4 + $0x1b4] ss:$8 sps:$4 sm:$0xff]   ;;  %v434_v24 = vrot.slane %v3810_v45, 1 }
 0x261   :  { %1089 = vmatprep.subr.bf16.mxu1 %v3284_v29  ;;  %v3312_v62 = vld [vmem:[#allocation4 + $0x1b0] ss:$8 sps:$4 sm:$0xff]   ;;  %v3317_v63 = vld [vmem:[#allocation4 + $0x1c4] ss:$8 sps:$4 sm:$0xff]   ;;  %v3315_v4 = vld [vmem:[#allocation4 + $0x1c0] ss:$8 sps:$4 sm:$0xff]  }
 0x262   :  { %v523_v41 = vsel %vm511_vm6, %v521_v36, %v522_v37  ;;  %v464_v1 = vld [vmem:[#allocation2 + $0x10] sm:$0xf0]  ;;  %v3834_v2 = vld [vmem:[#allocation2 + $0x18] sm:$0x1f]  ;;  %v3320_v16 = vld [vmem:[#allocation4 + $0x1d4] ss:$8 sps:$4 sm:$0xff]   ;;  %v436_v29 = vsel %vm433_vm8, %v434_v24, %v435_v23 }
 0x263   :  { %v488_v6 = vshrl.u32 %v464_v1, 16  ;;  %v491_v12 = vshll.u32 %v464_v1, 16  ;;  %v496_v13 = vshrl.u32 %v3834_v2, 16  ;;  %v499_v14 = vshll.u32 %v3834_v2, 16  ;;  %v3318_v17 = vld [vmem:[#allocation4 + $0x1d0] ss:$8 sps:$4 sm:$0xff]  }
 0x264   :  { %1090 = vmatpush1.bf16.msra.mxu1 %v3282_v32  ;;  %v3323_v22 = vld [vmem:[#allocation4 + $0x1e4] ss:$8 sps:$4 sm:$0xff]   ;;  %v3321_v25 = vld [vmem:[#allocation4 + $0x1e0] ss:$8 sps:$4 sm:$0xff]   ;;  %v3326_v28 = vld [vmem:[#allocation4 + $0x1f4] ss:$8 sps:$4 sm:$0xff]  }
 0x265   :  { %1091 = vmatprep.subr.bf16.mxu1 %v3287_v33  ;;  %v490_v18 = vrot.slane %v488_v6, 1  ;;  %v493_v19 = vrot.slane %v491_v12, 2  ;;  %v498_v20 = vrot.slane %v496_v13, 1  ;;  %v501_v21 = vrot.slane %v499_v14, 2  ;;  %v3324_v30 = vld [vmem:[#allocation4 + $0x1f0] ss:$8 sps:$4 sm:$0xff]  }
 0x266   :  { %v3329_v15 = vld [vmem:[#allocation4 + $0x204] ss:$8 sps:$4 sm:$0xff]   ;;  %v518_v31 = vrot.slane %v436_v29, 3  ;;  %v519_v9 = vrot.slane %v435_v23, 3  ;;  %v484_v45 = vrot.slane %v464_v1, 1  ;;  %v485_v11 = vrot.slane %v3816_v54, 1 }
 0x267   :  { %1077 = vmatmul.mubr.bf16.gmra.mrb[4].mxu1 %v536_v40  ;;  %v494_v26 = vor.u32 %v493_v19, %v490_v18  ;;  %v502_v27 = vor.u32 %v501_v21, %v498_v20  ;;  %v3327_v33 = vld [vmem:[#allocation4 + $0x200] ss:$8 sps:$4 sm:$0xff]   ;;  %v3332_v34 = vld [vmem:[#allocation4 + $0x214] ss:$8 sps:$4 sm:$0xff]  }
 0x268   :  { %1092 = vmatpush1.bf16.msra.mxu1 %v3285_v38  ;;  %1119 = vmatprep.mubr.bf16.mxu1 %v523_v41  ;;  %v520_v35 = vsel %vm511_vm6, %v518_v31, %v519_v9  ;;  %v486_v37 = vsel %vm433_vm8, %v484_v45, %v485_v11  ;;  %v3330_v38 = vld [vmem:[#allocation4 + $0x210] ss:$8 sps:$4 sm:$0xff]   ;;  %v541_v41 = vrot.slane %v485_v11, 3  ;;  %v3333_v54 = vld [vmem:[#allocation4 + $0x220] ss:$8 sps:$4 sm:$0xff]  }
 0x269   :  { %1093 = vmatprep.subr.bf16.mxu1 %v3290_v39  ;;  %v503_v10 = vsel %vm437_vm7, %v494_v26, %v502_v27  ;;  %v544_v32 = vrot.slane %v502_v27, 3  ;;  %v3335_v39 = vld [vmem:[#allocation4 + $0x224] ss:$8 sps:$4 sm:$0xff]   ;;  %v540_v40 = vrot.slane %v486_v37, 3 }
 0x26a   :  { %v543_v46 = vrot.slane %v503_v10, 3  ;;  %v3354_v37 = vld [vmem:[#allocation7 + $0x8] sm:$0xff]  }
 0x26c   :  { %1094 = vmatpush1.bf16.msra.mxu1 %v3288_v42  ;;  %v545_v36 = vsel %vm511_vm6, %v543_v46, %v544_v32  ;;  %v3338_v42 = vld [vmem:[#allocation4 + $0x234] ss:$8 sps:$4 sm:$0xff]  }
 0x26d   :  { %1095 = vmatprep.subr.bf16.mxu1 %v3293_v43  ;;  %v542_v43 = vsel %vm511_vm6, %v540_v40, %v541_v41  ;;  %v3357_v40 = vld [vmem:[#allocation7 + $0x58] sm:$0xff]  }
 0x26e   :  { %v3358_v41 = vld [vmem:[#allocation7 + $0x18] sm:$0xff]  }
 0x270   :  { %1096 = vmatpush1.bf16.msra.mxu1 %v3291_v47  ;;  %v3336_v47 = vld [vmem:[#allocation4 + $0x230] ss:$8 sps:$4 sm:$0xff]  }
 0x271   :  { %1097 = vmatprep.subr.bf16.mxu1 %v3296_v48  ;;  %v3341_v48 = vld [vmem:[#allocation4 + $0x244] ss:$8 sps:$4 sm:$0xff]  }
 0x274   :  { %1098 = vmatpush1.bf16.msra.mxu1 %v3294_v49  ;;  %v3339_v49 = vld [vmem:[#allocation4 + $0x240] ss:$8 sps:$4 sm:$0xff]  }
 0x275   :  { %1099 = vmatprep.subr.bf16.mxu1 %v3299_v50  ;;  %v3344_v50 = vld [vmem:[#allocation4 + $0x254] ss:$8 sps:$4 sm:$0xff]  }
 0x278   :  { %1100 = vmatpush1.bf16.msra.mxu1 %v3297_v51  ;;  %v3342_v51 = vld [vmem:[#allocation4 + $0x250] ss:$8 sps:$4 sm:$0xff]  }
 0x279   :  { %1101 = vmatprep.subr.bf16.mxu1 %v3302_v52  ;;  %v414_v52 = vld [vmem:[#allocation2] sm:$0xe0] }
 0x27c   :  { %1102 = vmatpush1.bf16.msra.mxu1 %v3300_v53  ;;  %v3347_v53 = vld [vmem:[#allocation4 + $0x264] ss:$8 sps:$4 sm:$0xff]  }
 0x27d   :  { %1103 = vmatprep.subr.bf16.mxu1 %v3305_v55  ;;  %v458_v55 = vrot.slane %v414_v52, 2  ;;  %v3368_v52 = vld [vmem:[#allocation7 + $0xc0] sm:$0xff]  }
 0x280   :  { %1104 = vmatpush1.bf16.msra.mxu1 %v3303_v56  ;;  %v459_v56 = vrot.slane %v3821_v0, 2 }
 0x281   :  { %1105 = vmatprep.subr.bf16.mxu1 %v3308_v57  ;;  %v3345_v57 = vld [vmem:[#allocation4 + $0x260] ss:$8 sps:$4 sm:$0xff]  }
 0x284   :  { %1106 = vmatpush1.bf16.msra.mxu1 %v3306_v58  ;;  %v3350_v58 = vld [vmem:[#allocation4 + $0x274] ss:$8 sps:$4 sm:$0xff]  }
 0x285   :  { %1107 = vmatprep.subr.bf16.mxu1 %v3311_v59  ;;  %v460_v59 = vsel %vm457_vm9, %v458_v55, %v459_v56 }
 0x288   :  { %1108 = vmatpush1.bf16.msra.mxu1 %v3309_v60  ;;  %v3348_v60 = vld [vmem:[#allocation4 + $0x270] ss:$8 sps:$4 sm:$0xff]  }
 0x289   :  { %1109 = vmatprep.subr.bf16.mxu1 %v3314_v61  ;;  %v466_v61 = vld [vmem:[#allocation2 + $0x10] sm:$0xe0] }
 0x28a   :  { %v506_v1 = vrot.slane %v466_v61, 2 }
 0x28c   :  { %1110 = vmatpush1.bf16.msra.mxu1 %v3312_v62  ;;  %v524_v62 = vrot.slane %v460_v59, 3 }
 0x28d   :  { %1111 = vmatprep.subr.bf16.mxu1 %v3317_v63  ;;  %v525_v63 = vrot.slane %v459_v56, 3 }
 0x28f   :  { %v526_v0 = vsel %vm511_vm6, %v524_v62, %v525_v63 }
 0x290   :  { %1112 = vmatpush1.bf16.msra.mxu1 %v3315_v4  ;;  %v507_v4 = vrot.slane %v3834_v2, 2 }
 0x291   :  { %1113 = vmatprep.subr.bf16.mxu1 %v3320_v16 }
 0x292   :  { %v508_v6 = vsel %vm457_vm9, %v506_v1, %v507_v4  ;;  %v547_v13 = vrot.slane %v507_v4, 3 }
 0x293   :  { %v546_v12 = vrot.slane %v508_v6, 3 }
 0x294   :  { %1114 = vmatpush1.bf16.msra.mxu1 %v3318_v17 }
 0x295   :  { %1115 = vmatprep.subr.bf16.mxu1 %v3323_v22  ;;  %v548_v14 = vsel %vm511_vm6, %v546_v12, %v547_v13 }
 0x298   :  { %1116 = vmatpush1.bf16.msra.mxu1 %v3321_v25 }
 0x299   :  { %1117 = vmatprep.subr.bf16.mxu1 %v3326_v28 }
 0x29c   :  { %1118 = vmatpush1.bf16.msra.mxu1 %v3324_v30 }
 0x29d   :  { %1140 = vmatprep.subr.bf16.mxu1 %v3329_v15 }
 0x29f   :  { %1120 = vmatmul.mubr.bf16.vlgmr.msra.gmra.mrb[0].mxu1 %v520_v35  ;;  %v3352_v35 = vld [vmem:[#allocation7] sm:$0xff]  }
 0x2a0   :  { %1129 = vmatprep.mubr.bf16.mxu1 %v545_v36  ;;  %1141 = vmatpush1.bf16.msra.mxu1 %v3327_v33  ;;  %v1193_v33 = vld [vmem:[%s4059_s8] sm:$0x1]  ;;  %v3353_v36 = vld [vmem:[#allocation7 + $0x48] sm:$0xff]  }
 0x2a1   :  { %1142 = vmatprep.subr.bf16.mxu1 %v3332_v34  ;;  %v3351_v34 = vld [vmem:[#allocation7 + $0x40] sm:$0xff]  }
 0x2a4   :  { %1143 = vmatpush1.bf16.msra.mxu1 %v3330_v38  ;;  %v3355_v38 = vld [vmem:[#allocation7 + $0x50] sm:$0xff]  }
 0x2a5   :  { %1144 = vmatprep.subr.bf16.mxu1 %v3335_v39  ;;  %v3356_v39 = vld [vmem:[#allocation7 + $0x10] sm:$0xff]  }
 0x2a7   :  { %1130 = vmatmul.mubr.bf16.gmra.mrb[4].mxu1 %v542_v43  ;;  %v3361_v43 = vld [vmem:[#allocation7 + $0x68] sm:$0xff]  }
 0x2a8   :  { %1145 = vmatpush1.bf16.msra.mxu1 %v3333_v54  ;;  %1172 = vmatprep.mubr.bf16.mxu1 %v3577_v44  ;;  %v3359_v54 = vld [vmem:[#allocation7 + $0x60] sm:$0xff]  }
 0x2a9   :  { %1146 = vmatprep.subr.bf16.mxu1 %v3338_v42  ;;  %v3360_v42 = vld [vmem:[#allocation7 + $0x20] sm:$0xff]  }
 0x2ac   :  { %1147 = vmatpush1.bf16.msra.mxu1 %v3336_v47  ;;  %v3362_v47 = vld [vmem:[#allocation7 + $0x28] sm:$0xff]  }
 0x2ad   :  { %1148 = vmatprep.subr.bf16.mxu1 %v3341_v48  ;;  %v3363_v48 = vld [vmem:[#allocation7 + $0x70] sm:$0xff]  }
 0x2b0   :  { %1149 = vmatpush1.bf16.msra.mxu1 %v3339_v49  ;;  %v3364_v49 = vld [vmem:[#allocation7 + $0x30] sm:$0xff]  }
 0x2b1   :  { %1150 = vmatprep.subr.bf16.mxu1 %v3344_v50  ;;  %v3365_v50 = vld [vmem:[#allocation7 + $0x78] sm:$0xff]  }
 0x2b4   :  { %1151 = vmatpush1.bf16.msra.mxu1 %v3342_v51  ;;  %v3366_v51 = vld [vmem:[#allocation7 + $0x38] sm:$0xff]  }
 0x2b5   :  { %1152 = vmatprep.subr.bf16.mxu1 %v3347_v53 }
 0x2b8   :  { %1153 = vmatpush1.bf16.msra.mxu1 %v3345_v57 }
 0x2b9   :  { %1154 = vmatprep.subr.bf16.mxu1 %v3350_v58 }
 0x2bc   :  { %1155 = vmatpush1.bf16.msra.mxu1 %v3348_v60 }
 0x2bd   :  { %3174 = vmatprep.subr.bf16.mxu1 %v3574_v7 }
 0x2bf   :  { %1173 = vmatmul.mubr.bf16.vlgmr.msra.gmra.mrb[0].mxu1 %v526_v0 }
 0x2c0   :  { %1182 = vmatprep.mubr.bf16.mxu1 %v3577_v44 }
 0x2c7   :  { %1183 = vmatmul.mubr.bf16.gmra.mrb[4].mxu1 %v548_v14  ;;  %v1361_v14 = vld [vmem:[%s4057_s6] sm:$0x3] }
 0x2c8   :  { %3101 = vmatprep.mubr.msk.f32.mxu1 %vm3575_vm3, %v3576_v8 }
 0x392   :  { %v3858_v16 = vpop.f32.mrb[0].mxu1 }
 0x393   :  { %v3860_v2 = vpop.f32.mrb[1].mxu1  ;;  %v1268_v18 = vmul.f32 %v3858_v16, %v3858_v16 }
 0x394   :  { %v3862_v17 = vpop.f32.mrb[2].mxu1  ;;  %v1269_v22 = vmul.f32 %v3860_v2, %v3860_v2 }
 0x395   :  { %v3118_v19 = vpack.c.bf16 %v3862_v17, %v3858_v16  ;;  %v1270_v20 = vmul.f32 %v3862_v17, %v3862_v17  ;;  %v3870_v21 = vpop.f32.mrb[3].mxu1 }
 0x396   :  { %v3116_v23 = vpack.c.bf16 %v3870_v21, %v3860_v2  ;;  %v1271_v24 = vmul.f32 %v3870_v21, %v3870_v21 }
 0x397   :  { %v3126_v25 = vpack.c.bf16 %v1270_v20, %v1268_v18  ;;  %v1369_v18 = vsub.s32 1, %v3791_v3 }
 0x398   :  { %3117 = vmatprep.subr.bf16.mxu0 %v3116_v23  ;;  %v3124_v26 = vpack.c.bf16 %v1271_v24, %v1269_v22  ;;  %v1366_v22 = vrot.slane %v1361_v14, %v3797_v5 }
 0x399   :  { %3119 = vmatpush1.bf16.msra.mxu0 %v3118_v19  ;;  %v3578_v19 = vmov 1966171168   ;;  %v1370_v23 = vrot.slane %v1361_v14, %v1369_v18 }
 0x39a   :  { %v3878_v27 = vpop.f32.mrb[4].mxu1  ;;  %v1382_v20 = vunpack.c.l.s4 %v3578_v19 }
 0x39b   :  { %v3880_v28 = vpop.f32.mrb[5].mxu1  ;;  %v1272_v30 = vmul.f32 %v3878_v27, %v3878_v27 }
 0x39c   :  { %v3882_v29 = vpop.f32.mrb[6].mxu1  ;;  %v1273_v9 = vmul.f32 %v3880_v28, %v3880_v28 }
 0x39d   :  { %v3122_v10 = vpack.c.bf16 %v3882_v29, %v3878_v27  ;;  %v1274_v15 = vmul.f32 %v3882_v29, %v3882_v29  ;;  %v3890_v31 = vpop.f32.mrb[7].mxu1 }
 0x39e   :  { %v3120_v46 = vpack.c.bf16 %v3890_v31, %v3880_v28  ;;  %v1275_v32 = vmul.f32 %v3890_v31, %v3890_v31 }
 0x39f   :  { %v3130_v45 = vpack.c.bf16 %v1274_v15, %v1272_v30 }
 0x3a0   :  { %3121 = vmatprep.subr.bf16.mxu0 %v3120_v46  ;;  %v3128_v11 = vpack.c.bf16 %v1275_v32, %v1273_v9 }
 0x3a1   :  { %3123 = vmatpush1.bf16.msra.mxu0 %v3122_v10 }
 0x3a2   :  { %3125 = vmatprep.subr.bf16.mxu0 %v3124_v26 }
 0x3a4   :  { %2744 = vmatmul.mubr.msk.f32.vlgmr.msra.gmra.mrb[8].mxu0 %vm198_vm4, %v1193_v33 }
 0x3a5   :  { %3127 = vmatpush1.bf16.msra.mxu0 %v3126_v25  ;;  %1340 = vmatprep.mubr.f32.mxu0 %v3576_v8  ;;  %v1383_v25 = vunpack.c.0.s8 %v1382_v20 }
 0x3a6   :  { %3129 = vmatprep.subr.bf16.mxu0 %v3128_v11 }
 0x3a7   :  { %v1386_v32 = vsub.s32 %v1383_v25, %v3791_v3 }
 0x3a9   :  { %3131 = vmatpush1.bf16.msra.mxu0 %v3130_v45 }
 0x3aa   :  { %2840 = vmatprep.subr.bf16.mxu0 %v3351_v34 }
 0x3ac   :  { %2745 = vmatmul.mubr.msk.f32.vlgmr.msra.gmra.mrb[10].mxu0 %vm198_vm4, %v1193_v33 }
 0x3ad   :  { %2841 = vmatpush3.bf16.msra.mxu0 %v3352_v35 }
 0x3ae   :  { %2842 = vmatprep.subr.bf16.mxu0 %v3353_v36 }
 0x3b1   :  { %2843 = vmatpush3.bf16.msra.mxu0 %v3354_v37 }
 0x3b2   :  { %2844 = vmatprep.subr.bf16.mxu0 %v3355_v38 }
 0x3b5   :  { %2845 = vmatpush3.bf16.msra.mxu0 %v3356_v39 }
 0x3b6   :  { %2846 = vmatprep.subr.bf16.mxu0 %v3357_v40 }
 0x3b9   :  { %2847 = vmatpush3.bf16.msra.mxu0 %v3358_v41 }
 0x3ba   :  { %2848 = vmatprep.subr.bf16.mxu0 %v3359_v54 }
 0x3bd   :  { %2849 = vmatpush3.bf16.msra.mxu0 %v3360_v42 }
 0x3be   :  { %2850 = vmatprep.subr.bf16.mxu0 %v3361_v43 }
 0x3c1   :  { %2851 = vmatpush3.bf16.msra.mxu0 %v3362_v47 }
 0x3c2   :  { %2852 = vmatprep.subr.bf16.mxu0 %v3363_v48 }
 0x3c5   :  { %2853 = vmatpush3.bf16.msra.mxu0 %v3364_v49 }
 0x3c6   :  { %2854 = vmatprep.subr.bf16.mxu0 %v3365_v50 }
 0x3c9   :  { %2855 = vmatpush3.bf16.msra.mxu0 %v3366_v51 }
 0x3ca   :  { %2868 = vmatprep.subr.bf16.mxu0 %v3368_v52 }
 0x477   :  { %v1263_v53 = vpop.f32.mrb[8].mxu0 }
 0x478   :  { %v1265_v55 = vpop.f32.mrb[9].mxu0  ;;  %v1347_v56 = vmul.f32 0.035714287, %v1263_v53 }
 0x479   :  { %v1348_v57 = vmul.f32 0.035714287, %v1265_v55 }
 0x47a   :  { %v1351_v59 = vmul.f32 %v1347_v56, %v1347_v56 }
 0x47b   :  { %v1352_v62 = vmul.f32 %v1348_v57, %v1348_v57 }
 0x47f   :  { %v1342_v58 = vpop.f32.mrb[10].mxu0 }
 0x480   :  { %v1349_v60 = vmul.f32 0.035714287, %v1342_v58  ;;  %v1344_v61 = vpop.f32.mrb[11].mxu0 }
 0x481   :  { %v1350_v63 = vmul.f32 0.035714287, %v1344_v61 }
 0x482   :  { %v1353_v1 = vsub.f32 %v1349_v60, %v1351_v59 }
 0x483   :  { %v1354_v4 = vsub.f32 %v1350_v63, %v1352_v62 }
 0x484   :  { %v1355_v0 = vmax.f32 %v1353_v1, 0.0 }
 0x485   :  { %v1356_v6 = vmax.f32 %v1354_v4, 0.0 }
 0x486   :  { %v1357_v12 = vadd.f32 1e-05, %v1355_v0 }
 0x487   :  { %v1358_v13 = vadd.f32 1e-05, %v1356_v6 }
 0x488   :  { %3417 = vrsqrt.f32 %v1357_v12 }
 0x489   :  { %3419 = vrsqrt.f32 %v1358_v13 }
 0x492   :  { %v3418_v24 = vpop.eup %3417 }
 0x493   :  { %v3420_v26 = vpop.eup %3419  ;;  %v1373_v30 = vmul.f32 %v3418_v24, %v1366_v22 }
 0x494   :  { %v1374_v10 = vmul.f32 %v3420_v26, %v1370_v23 }
 0x495   :  { %v1376_v15 = vmul.f32 %v1373_v30, %v1347_v56  ;;  %v1400_v9 = vrot.slane %v1373_v30, %v3797_v5 }
 0x496   :  { %v1377_v46 = vmul.f32 %v1374_v10, %v1348_v57  ;;  %v1404_v45 = vrot.slane %v1374_v10, %v3797_v5 }
 0x497   :  { %v1405_v11 = vmul.f32 %v1400_v9, %v3858_v16  ;;  %v1407_v33 = vmul.f32 %v1400_v9, %v3862_v17  ;;  %v1409_v34 = vmul.f32 %v1400_v9, %v3878_v27  ;;  %v1411_v35 = vmul.f32 %v1400_v9, %v3882_v29  ;;  %v1375_v16 = vld [vmem:[%s4058_s7] sm:$0x3] }
 0x498   :  { %v1380_v36 = vcombine.low %v1376_v15, %v1377_v46  ;;  %v1406_v37 = vmul.f32 %v1404_v45, %v3860_v2  ;;  %v1408_v38 = vmul.f32 %v1404_v45, %v3870_v21  ;;  %v1410_v39 = vmul.f32 %v1404_v45, %v3880_v28  ;;  %v1497_v15 = vld [vmem:[#allocation3] sm:$0x88] }
 0x499   :  { %v1412_v40 = vmul.f32 %v1404_v45, %v3890_v31 }
 0x49a   :  { %v1387_v3 = vrot.slane %v1380_v36, %v1386_v32  ;;  %v1553_v36 = vld [vmem:[#allocation3 + $0x18] sm:$0x88] }
 0x49c   :  { %v1394_v41 = vrot.slane %v1387_v3, %v1386_v32 }
 0x49e   :  { %v1396_v17 = vsub.f32 %v1375_v16, %v1394_v41 }
 0x4a0   :  { %v1417_v27 = vrot.slane %v1396_v17, %v3797_v5  ;;  %v1421_v54 = vrot.slane %v1396_v17, %v1369_v18 }
 0x4a2   :  { %v1424_v29 = vadd.f32 %v1417_v27, %v1405_v11  ;;  %v1425_v42 = vadd.f32 %v1421_v54, %v1406_v37  ;;  %v1426_v43 = vadd.f32 %v1417_v27, %v1407_v33  ;;  %v1427_v2 = vadd.f32 %v1421_v54, %v1408_v38 }
 0x4a3   :  { %v1428_v47 = vadd.f32 %v1417_v27, %v1409_v34  ;;  %v1429_v21 = vadd.f32 %v1421_v54, %v1410_v39  ;;  %v1430_v48 = vadd.f32 %v1417_v27, %v1411_v35  ;;  %v1431_v28 = vadd.f32 %v1421_v54, %v1412_v40 }
 0x4a4   :  { %v1432_v49 = vmul.f32 0.5, %v1424_v29  ;;  %v1433_v31 = vmul.f32 0.5, %v1425_v42  ;;  %v1434_v50 = vmul.f32 0.5, %v1426_v43  ;;  %v1435_v51 = vmul.f32 0.5, %v1427_v2  ;;  %v3370_v29 = vld [vmem:[#allocation7 + $0x80] sm:$0xff]  }
 0x4a5   :  { %v1436_v52 = vmul.f32 0.5, %v1428_v47  ;;  %v1437_v53 = vmul.f32 0.5, %v1429_v21  ;;  %v1438_v55 = vmul.f32 0.5, %v1430_v48  ;;  %v1439_v56 = vmul.f32 0.5, %v1431_v28  ;;  %v3372_v28 = vld [vmem:[#allocation7 + $0xc8] sm:$0xff]  }
 0x4a6   :  { %3421 = vtanh.f32 %v1432_v49 }
 0x4a7   :  { %3423 = vtanh.f32 %v1433_v31 }
 0x4a8   :  { %3425 = vtanh.f32 %v1434_v50 }
 0x4a9   :  { %3427 = vtanh.f32 %v1435_v51 }
 0x4aa   :  { %3429 = vtanh.f32 %v1436_v52 }
 0x4ab   :  { %3431 = vtanh.f32 %v1437_v53 }
 0x4ac   :  { %3433 = vtanh.f32 %v1438_v55  ;;  %v3373_v55 = vld [vmem:[#allocation7 + $0x88] sm:$0xff]  }
 0x4ad   :  { %3435 = vtanh.f32 %v1439_v56 }
 0x4b0   :  { %v3422_v57 = vpop.eup %3421 }
 0x4b1   :  { %v3424_v58 = vpop.eup %3423  ;;  %v1448_v59 = vmul.f32 0.5, %v3422_v57 }
 0x4b2   :  { %v3426_v60 = vpop.eup %3425  ;;  %v1449_v61 = vmul.f32 0.5, %v3424_v58 }
 0x4b3   :  { %v3428_v62 = vpop.eup %3427  ;;  %v1450_v63 = vmul.f32 0.5, %v3426_v60  ;;  %v1456_v1 = vadd.f32 0.5, %v1448_v59  ;;  %v3374_v60 = vld [vmem:[#allocation7 + $0xd0] sm:$0xff]  }
 0x4b4   :  { %v3430_v4 = vpop.eup %3429  ;;  %v1451_v0 = vmul.f32 0.5, %v3428_v62  ;;  %v1457_v6 = vadd.f32 0.5, %v1449_v61 }
 0x4b5   :  { %v3432_v12 = vpop.eup %3431  ;;  %v1452_v13 = vmul.f32 0.5, %v3430_v4  ;;  %v1458_v14 = vadd.f32 0.5, %v1450_v63  ;;  %v3376_v4 = vld [vmem:[#allocation7 + $0x90] sm:$0xff]  }
 0x4b6   :  { %v3434_v18 = vpop.eup %3433  ;;  %v1453_v19 = vmul.f32 0.5, %v3432_v12  ;;  %v1459_v20 = vadd.f32 0.5, %v1451_v0  ;;  %v3924_v22 = vpack.c.bf16 %v1457_v6, %v1456_v1  ;;  %v3378_v0 = vld [vmem:[#allocation7 + $0xd8] sm:$0xff]  }
 0x4b7   :  { %v3436_v23 = vpop.eup %3435  ;;  %v1454_v24 = vmul.f32 0.5, %v3434_v18  ;;  %v1460_v25 = vadd.f32 0.5, %v1452_v13  ;;  %v3379_v13 = vld [vmem:[#allocation7 + $0x98] sm:$0xff]   ;;  %v3380_v18 = vld [vmem:[#allocation7 + $0xe0] sm:$0xff]  }
 0x4b8   :  { %v1455_v26 = vmul.f32 0.5, %v3436_v23  ;;  %v1461_v30 = vadd.f32 0.5, %v1453_v19  ;;  %v2824_v10 = vpack.c.bf16 %v1459_v20, %v1458_v14  ;;  %v2751_v45 = vcombine.high %v1497_v15, %v3924_v22  ;;  %v3381_v23 = vld [vmem:[#allocation7 + $0xa0] sm:$0xff]  }
 0x4b9   :  { %v1462_v9 = vadd.f32 0.5, %v1454_v24  ;;  %v3932_v33 = vcombine.low %v1497_v15, %v3924_v22  ;;  %v3383_v15 = vld [vmem:[#allocation7 + $0xa8] sm:$0xff]  }
 0x4ba   :  { %v1463_v46 = vadd.f32 0.5, %v1455_v26  ;;  %1479 = vst [vmem:[#allocation3 + $0x10] sm:$0xff] %v2824_v10  ;;  %v3926_v32 = vpack.c.bf16 %v1461_v30, %v1460_v25  ;;  %v1534_v34 = vshll.u32 %v2751_v45, 16  ;;  %v1612_v40 = vrot.slane %v2751_v45, 3  ;;  %v3382_v25 = vld [vmem:[#allocation7 + $0xe8] sm:$0xff]  }
 0x4bb   :  { %1495 = vst [vmem:[#allocation3 + $0x10] sm:$0x88] %v3577_v44  ;;  %v1609_v3 = vrot.slane %v3932_v33, 3  ;;  %v1532_v43 = vshrl.u32 %v2751_v45, 16  ;;  %v1522_v24 = vshll.u32 %v3932_v33, 16 }
 0x4bc   :  { %v2826_v11 = vpack.c.bf16 %v1463_v46, %v1462_v9  ;;  %v1536_v41 = vrot.slane %v1534_v34, 1  ;;  %v3948_v56 = vcombine.low %v1553_v36, %v3926_v32  ;;  %v3384_v9 = vld [vmem:[#allocation7 + $0xf0] sm:$0xff]  }
 0x4bd   :  { %v1524_v46 = vrot.slane %v1522_v24, 1  ;;  %v3403_v24 = vld [vmem:[#allocation7 + $0x170] sm:$0xff]  }
 0x4be   :  { %1494 = vst [vmem:[#allocation3 + $0x28] sm:$0xff] %v2826_v11  ;;  %v1537_v31 = vor.u32 %v1536_v41, %v1532_v43  ;;  %v1631_v1 = vrot.slane %v3948_v56, 3 }
 0x4bf   :  { %1496 = vst [vmem:[#allocation3 + $0x28] sm:$0x88] %v3577_v44  ;;  %v3940_v44 = vcombine.high %v1553_v36, %v3926_v32 }
 0x4c1   :  { %v1499_v35 = vld [vmem:[#allocation3 + $0x10] sm:$0x77]  ;;  %v1634_v52 = vrot.slane %v3940_v44, 3  ;;  %v1590_v30 = vshll.u32 %v3940_v44, 16 }
 0x4c2   :  { %v2753_v37 = vcombine.high %v1499_v35, %v1499_v35  ;;  %v2752_v38 = vcombine.low %v1499_v35, %v1499_v35  ;;  %v3934_v39 = vld [vmem:[#allocation3 + $0x10] sm:$0xff]  ;;  %v1520_v35 = vshrl.u32 %v3932_v33, 16  ;;  %v3387_v33 = vld [vmem:[#allocation7 + $0xb8] sm:$0xff]  }
 0x4c3   :  { %v2755_v16 = vcombine.high %v3934_v39, %v3934_v39  ;;  %v2756_v54 = vcombine.low %v3924_v22, %v3934_v39  ;;  %v2754_v19 = vcombine.low %v3934_v39, %v3934_v39  ;;  %v1592_v11 = vrot.slane %v1590_v30, 1  ;;  %v3406_v30 = vld [vmem:[#allocation7 + $0x138] sm:$0xff]  }
 0x4c4   :  { %v1613_v17 = vrot.slane %v2753_v37, 3  ;;  %v1610_v27 = vrot.slane %v2752_v38, 3  ;;  %v3385_v37 = vld [vmem:[#allocation7 + $0xb0] sm:$0xff]  }
 0x4c5   :  { %v1555_v42 = vld [vmem:[#allocation3 + $0x28] sm:$0x77]  ;;  %v1539_v2 = vshll.u32 %v2755_v16, 16  ;;  %v1546_v51 = vshrl.u32 %v2755_v16, 16  ;;  %v1527_v26 = vshll.u32 %v2754_v19, 16  ;;  %v1543_v38 = vshrl.u32 %v2754_v19, 16 }
 0x4c6   :  { %v1614_v47 = vsel %vm511_vm6, %v1612_v40, %v1613_v17  ;;  %v1611_v21 = vsel %vm511_vm6, %v1609_v3, %v1610_v27  ;;  %v2761_v48 = vcombine.high %v1555_v42, %v1555_v42  ;;  %v2760_v49 = vcombine.low %v1555_v42, %v1555_v42  ;;  %v3955_v14 = vld [vmem:[#allocation3 + $0x28] sm:$0xff]  ;;  %v3400_v19 = vld [vmem:[#allocation7 + $0x120] sm:$0xff]  }
 0x4c7   :  { %2069 = vmatprep.mubr.bf16.mxu0 %v1614_v47  ;;  %v1541_v50 = vrot.slane %v1539_v2, 1  ;;  %v2763_v20 = vcombine.high %v3955_v14, %v3955_v14  ;;  %v1529_v45 = vrot.slane %v1527_v26, 1  ;;  %v2762_v34 = vcombine.low %v3955_v14, %v3955_v14  ;;  %v3386_v3 = vld [vmem:[#allocation7 + $0xf8] sm:$0xff]  }
 0x4c8   :  { %2070 = vmatmul.mubr.bf16.vlgmr.msra.gmra.mrb[12].mxu0 %v1611_v21  ;;  %v1635_v53 = vrot.slane %v2761_v48, 3  ;;  %v1632_v61 = vrot.slane %v2760_v49, 3  ;;  %v1588_v40 = vshrl.u32 %v3940_v44, 16  ;;  %v1525_v16 = vor.u32 %v1524_v46, %v1520_v35  ;;  %v3389_v21 = vld [vmem:[#allocation7 + $0x140] sm:$0xff]   ;;  %v3405_v26 = vld [vmem:[#allocation7 + $0x178] sm:$0xff]  }
 0x4c9   :  { %2869 = vmatpush3.bf16.msra.mxu0 %v3370_v29  ;;  %v1542_v57 = vsel %vm415_vm5, %v1537_v31, %v1541_v50  ;;  %v1548_v58 = vor.u32 %v1546_v51, %v1541_v50  ;;  %v1595_v10 = vshll.u32 %v2763_v20, 16  ;;  %v1602_v41 = vshrl.u32 %v2763_v20, 16  ;;  %v3401_v20 = vld [vmem:[#allocation7 + $0x168] sm:$0xff]  }
 0x4ca   :  { %v1636_v59 = vsel %vm511_vm6, %v1634_v52, %v1635_v53  ;;  %2870 = vmatprep.subr.bf16.mxu0 %v3372_v28  ;;  %v1618_v62 = vrot.slane %v1542_v57, 3  ;;  %v1633_v6 = vsel %vm511_vm6, %v1631_v1, %v1632_v61  ;;  %v1578_v17 = vshll.u32 %v3948_v56, 16  ;;  %v3391_v52 = vld [vmem:[#allocation7 + $0x100] sm:$0xff]  }
 0x4cb   :  { %2077 = vmatprep.mubr.bf16.mxu0 %v1636_v59  ;;  %v1619_v63 = vrot.slane %v1548_v58, 3  ;;  %v1597_v36 = vrot.slane %v1595_v10, 1  ;;  %v1545_v27 = vor.u32 %v1543_v38, %v1529_v45  ;;  %v1593_v29 = vor.u32 %v1592_v11, %v1588_v40 }
 0x4cc   :  { %v1583_v42 = vshll.u32 %v2762_v34, 16  ;;  %v1530_v43 = vsel %vm415_vm5, %v1525_v16, %v1529_v45  ;;  %v1580_v48 = vrot.slane %v1578_v17, 1  ;;  %v1576_v51 = vshrl.u32 %v3948_v56, 16 }
 0x4cd   :  { %2871 = vmatpush3.bf16.msra.mxu0 %v3373_v55  ;;  %v1620_v12 = vsel %vm511_vm6, %v1618_v62, %v1619_v63  ;;  %v1604_v2 = vor.u32 %v1602_v41, %v1597_v36  ;;  %v1598_v47 = vsel %vm415_vm5, %v1593_v29, %v1597_v36  ;;  %v1615_v44 = vrot.slane %v1530_v43, 3  ;;  %v3392_v55 = vld [vmem:[#allocation7 + $0x148] sm:$0xff]   ;;  %v3395_v63 = vld [vmem:[#allocation7 + $0x150] sm:$0xff]  }
 0x4ce   :  { %2872 = vmatprep.subr.bf16.mxu0 %v3374_v60  ;;  %v1616_v28 = vrot.slane %v1545_v27, 3  ;;  %v1585_v49 = vrot.slane %v1583_v42, 1  ;;  %v1640_v31 = vrot.slane %v1598_v47, 3  ;;  %v1599_v53 = vshrl.u32 %v2762_v34, 16  ;;  %v3393_v62 = vld [vmem:[#allocation7 + $0x108] sm:$0xff]  }
 0x4cf   :  { %v1641_v50 = vrot.slane %v1604_v2, 3  ;;  %v1581_v57 = vor.u32 %v1580_v48, %v1576_v51  ;;  %v2765_v10 = vcombine.high %v3926_v32, %v3955_v14 }
 0x4d0   :  { %2078 = vmatmul.mubr.bf16.gmra.mrb[16].mxu0 %v1633_v6  ;;  %v1617_v58 = vsel %vm511_vm6, %v1615_v44, %v1616_v28  ;;  %v1601_v59 = vor.u32 %v1599_v53, %v1585_v49 }
 0x4d1   :  { %2873 = vmatpush3.bf16.msra.mxu0 %v3376_v4  ;;  %2118 = vmatprep.mubr.bf16.mxu0 %v1620_v12  ;;  %v1642_v60 = vsel %vm511_vm6, %v1640_v31, %v1641_v50  ;;  %v1586_v61 = vsel %vm415_vm5, %v1581_v57, %v1585_v49  ;;  %v3396_v4 = vld [vmem:[#allocation7 + $0x110] sm:$0xff]   ;;  %v2757_v12 = vcombine.high %v3924_v22, %v3934_v39 }
 0x4d2   :  { %2874 = vmatprep.subr.bf16.mxu0 %v3378_v0  ;;  %v1637_v56 = vrot.slane %v1586_v61, 3  ;;  %v1638_v1 = vrot.slane %v1601_v59, 3  ;;  %v3397_v0 = vld [vmem:[#allocation7 + $0x158] sm:$0xff]  }
 0x4d4   :  { %v1639_v6 = vsel %vm511_vm6, %v1637_v56, %v1638_v1 }
 0x4d5   :  { %2875 = vmatpush3.bf16.msra.mxu0 %v3379_v13  ;;  %v3398_v13 = vld [vmem:[#allocation7 + $0x118] sm:$0xff]  }
 0x4d6   :  { %2876 = vmatprep.subr.bf16.mxu0 %v3380_v18  ;;  %v3399_v18 = vld [vmem:[#allocation7 + $0x160] sm:$0xff]  }
 0x4d9   :  { %2877 = vmatpush3.bf16.msra.mxu0 %v3381_v23  ;;  %v3402_v23 = vld [vmem:[#allocation7 + $0x128] sm:$0xff]  }
 0x4da   :  { %2878 = vmatprep.subr.bf16.mxu0 %v3382_v25  ;;  %v3404_v25 = vld [vmem:[#allocation7 + $0x130] sm:$0xff]  }
 0x4dd   :  { %2879 = vmatpush3.bf16.msra.mxu0 %v3383_v15  ;;  %v2764_v15 = vcombine.low %v3926_v32, %v3955_v14 }
 0x4de   :  { %2880 = vmatprep.subr.bf16.mxu0 %v3384_v9 }
 0x4e1   :  { %2881 = vmatpush3.bf16.msra.mxu0 %v3385_v37 }
 0x4e2   :  { %2882 = vmatprep.subr.bf16.mxu0 %v3386_v3 }
 0x4e5   :  { %2883 = vmatpush3.bf16.msra.mxu0 %v3387_v33 }
 0x4e6   :  { %2896 = vmatprep.subr.bf16.mxu0 %v3389_v21 }
 0x4e8   :  { %2119 = vmatmul.mubr.bf16.vlgmr.msra.gmra.mrb[20].mxu0 %v1617_v58 }
 0x4e9   :  { %2126 = vmatprep.mubr.bf16.mxu0 %v1642_v60  ;;  %2897 = vmatpush3.bf16.msra.mxu0 %v3391_v52 }
 0x4ea   :  { %2898 = vmatprep.subr.bf16.mxu0 %v3392_v55 }
 0x4ed   :  { %2899 = vmatpush3.bf16.msra.mxu0 %v3393_v62 }
 0x4ee   :  { %2900 = vmatprep.subr.bf16.mxu0 %v3395_v63 }
 0x4f0   :  { %2127 = vmatmul.mubr.bf16.gmra.mrb[24].mxu0 %v1639_v6  ;;  %v2184_v6 = vld [vmem:[%s4063_s12] sm:$0x1] }
 0x4f1   :  { %2901 = vmatpush3.bf16.msra.mxu0 %v3396_v4  ;;  %2167 = vmatprep.mubr.bf16.mxu0 %v2757_v12 }
 0x4f2   :  { %2902 = vmatprep.subr.bf16.mxu0 %v3397_v0 }
 0x4f5   :  { %2903 = vmatpush3.bf16.msra.mxu0 %v3398_v13 }
 0x4f6   :  { %2904 = vmatprep.subr.bf16.mxu0 %v3399_v18 }
 0x4f9   :  { %2905 = vmatpush3.bf16.msra.mxu0 %v3400_v19 }
 0x4fa   :  { %2906 = vmatprep.subr.bf16.mxu0 %v3401_v20 }
 0x4fd   :  { %2907 = vmatpush3.bf16.msra.mxu0 %v3402_v23 }
 0x4fe   :  { %2908 = vmatprep.subr.bf16.mxu0 %v3403_v24 }
 0x501   :  { %2909 = vmatpush3.bf16.msra.mxu0 %v3404_v25 }
 0x502   :  { %2910 = vmatprep.subr.bf16.mxu0 %v3405_v26 }
 0x505   :  { %2911 = vmatpush3.bf16.msra.mxu0 %v3406_v30 }
 0x506   :  { %3132 = vmatprep.subr.bf16.mxu0 %v3574_v7 }
 0x508   :  { %2168 = vmatmul.mubr.bf16.vlgmr.msra.gmra.mrb[28].mxu0 %v2756_v54 }
 0x509   :  { %2175 = vmatprep.mubr.bf16.mxu0 %v2765_v10 }
 0x510   :  { %2176 = vmatmul.mubr.bf16.gmra.mrb[32].mxu0 %v2764_v15 }
 0x511   :  { %3009 = vmatprep.mubr.msk.f32.mxu0 %vm3575_vm3, %v3576_v8 }
 0x59b   :  { %v2856_v9 = vpop.f32.mrb[12].mxu0 }
 0x59c   :  { %v2857_v46 = vpop.f32.mrb[13].mxu0 }
 0x59d   :  { %v2858_v45 = vadd.f32 %v2857_v46, %v2856_v9  ;;  %v2859_v11 = vpop.f32.mrb[14].mxu0 }
 0x59e   :  { %v2860_v34 = vpop.f32.mrb[15].mxu0 }
 0x59f   :  { %v2861_v35 = vadd.f32 %v2860_v34, %v2859_v11 }
 0x5a3   :  { %v2862_v36 = vpop.f32.mrb[16].mxu0 }
 0x5a4   :  { %v2863_v37 = vpop.f32.mrb[17].mxu0 }
 0x5a5   :  { %v2864_v38 = vadd.f32 %v2863_v37, %v2862_v36  ;;  %v2865_v40 = vpop.f32.mrb[18].mxu0 }
 0x5a6   :  { %v2866_v22 = vpop.f32.mrb[19].mxu0 }
 0x5a7   :  { %v2867_v39 = vadd.f32 %v2866_v22, %v2865_v40 }
 0x5bb   :  { %v2884_v54 = vpop.f32.mrb[20].mxu0 }
 0x5bc   :  { %v2885_v3 = vpop.f32.mrb[21].mxu0 }
 0x5bd   :  { %v2886_v16 = vadd.f32 %v2885_v3, %v2884_v54  ;;  %v2887_v32 = vpop.f32.mrb[22].mxu0 }
 0x5be   :  { %v2888_v14 = vpop.f32.mrb[23].mxu0 }
 0x5bf   :  { %v2121_v41 = vadd.f32 %v2886_v16, %v2858_v45  ;;  %v2889_v17 = vadd.f32 %v2888_v14, %v2887_v32  ;;  %v2339_v45 = vld [vmem:[%s4061_s10] sm:$0x1] }
 0x5c1   :  { %v2124_v27 = vadd.f32 %v2889_v17, %v2861_v35  ;;  %v2341_v35 = vld [vmem:[%s4062_s11] sm:$0x1] }
 0x5c3   :  { %v2890_v29 = vpop.f32.mrb[24].mxu0 }
 0x5c4   :  { %v2891_v42 = vpop.f32.mrb[25].mxu0 }
 0x5c5   :  { %v2892_v43 = vadd.f32 %v2891_v42, %v2890_v29  ;;  %v2893_v2 = vpop.f32.mrb[26].mxu0 }
 0x5c6   :  { %v2894_v33 = vpop.f32.mrb[27].mxu0 }
 0x5c7   :  { %v2129_v47 = vadd.f32 %v2892_v43, %v2864_v38  ;;  %v2895_v21 = vadd.f32 %v2894_v33, %v2893_v2 }
 0x5c9   :  { %v2132_v48 = vadd.f32 %v2895_v21, %v2867_v39 }
 0x5db   :  { %v2912_v44 = vpop.f32.mrb[28].mxu0 }
 0x5dc   :  { %v2913_v28 = vpop.f32.mrb[29].mxu0 }
 0x5dd   :  { %v2914_v49 = vadd.f32 %v2913_v28, %v2912_v44  ;;  %v2915_v31 = vpop.f32.mrb[30].mxu0 }
 0x5de   :  { %v2916_v50 = vpop.f32.mrb[31].mxu0 }
 0x5df   :  { %v2170_v51 = vadd.f32 %v2914_v49, %v2121_v41  ;;  %v2917_v52 = vadd.f32 %v2916_v50, %v2915_v31 }
 0x5e1   :  { %v2173_v53 = vadd.f32 %v2917_v52, %v2124_v27  ;;  %v2258_v0 = vmul.f32 %v2170_v51, %v2170_v51 }
 0x5e3   :  { %v3133_v55 = vpack.c.bf16 %v2173_v53, %v2170_v51  ;;  %v2918_v57 = vpop.f32.mrb[32].mxu0  ;;  %v2259_v1 = vmul.f32 %v2173_v53, %v2173_v53 }
 0x5e4   :  { %v2919_v58 = vpop.f32.mrb[33].mxu0 }
 0x5e5   :  { %v2920_v59 = vadd.f32 %v2919_v58, %v2918_v57  ;;  %v2921_v60 = vpop.f32.mrb[34].mxu0  ;;  %3134 = vmatpush3.bf16.msra.mxu0 %v3133_v55  ;;  %v3139_v13 = vpack.c.bf16 %v2259_v1, %v2258_v0  ;;  %v2453_v55 = vld [vmem:[#allocation9 + $0x8] sm:$0xff]  ;;  %v2378_v57 = vld [vmem:[%s4064_s13] sm:$0x3] }
 0x5e6   :  { %v2922_v61 = vpop.f32.mrb[35].mxu0  ;;  %3135 = vmatprep.subr.bf16.mxu0 %v3574_v7  ;;  %v2458_v1 = vld [vmem:[#allocation9 + $0x30] sm:$0xff] }
 0x5e7   :  { %v2178_v62 = vadd.f32 %v2920_v59, %v2129_v47  ;;  %v2923_v63 = vadd.f32 %v2922_v61, %v2921_v60  ;;  %v2454_v59 = vld [vmem:[#allocation9 + $0x10] sm:$0xff]  ;;  %v2455_v60 = vld [vmem:[#allocation9 + $0x18] sm:$0xff] }
 0x5e8   :  { %v3154_v61 = vpack.c.bf16 %v2455_v60, %v2454_v59 }
 0x5e9   :  { %v2181_v56 = vadd.f32 %v2923_v63, %v2132_v48  ;;  %v2260_v18 = vmul.f32 %v2178_v62, %v2178_v62  ;;  %v2457_v63 = vld [vmem:[#allocation9 + $0x28] sm:$0xff] }
 0x5eb   :  { %v3136_v4 = vpack.c.bf16 %v2181_v56, %v2178_v62  ;;  %v2261_v12 = vmul.f32 %v2181_v56, %v2181_v56 }
 0x5ed   :  { %3137 = vmatpush3.bf16.msra.mxu0 %v3136_v4  ;;  %v3142_v19 = vpack.c.bf16 %v2261_v12, %v2260_v18  ;;  %v2459_v4 = vld [vmem:[#allocation9 + $0x38] sm:$0xff]  ;;  %v2461_v12 = vld [vmem:[#allocation9 + $0x48] sm:$0xff] }
 0x5ee   :  { %3138 = vmatprep.subr.bf16.mxu0 %v3574_v7  ;;  %v3160_v0 = vpack.c.bf16 %v2459_v4, %v2458_v1  ;;  %v2463_v18 = vld [vmem:[#allocation9 + $0x58] sm:$0xff] }
 0x5f0   :  { %3010 = vmatmul.mubr.msk.f32.vlgmr.msra.gmra.mrb[36].mxu0 %vm198_vm4, %v2184_v6 }
 0x5f1   :  { %3140 = vmatpush3.bf16.msra.mxu0 %v3139_v13  ;;  %3020 = vmatprep.mubr.msk.f32.mxu0 %vm3575_vm3, %v3576_v8 }
 0x5f2   :  { %3141 = vmatprep.subr.bf16.mxu0 %v3574_v7 }
 0x5f5   :  { %3143 = vmatpush3.bf16.msra.mxu0 %v3142_v19 }
 0x5f6   :  { %3144 = vmatprep.subr.bf16.mxu0 %v3574_v7 }
 0x5f8   :  { %3021 = vmatmul.mubr.msk.f32.vlgmr.msra.gmra.mrb[38].mxu0 %vm198_vm4, %v2184_v6  ;;  %v2460_v6 = vld [vmem:[#allocation9 + $0x40] sm:$0xff] }
 0x5f9   :  { %3031 = vmatprep.mubr.msk.f32.mxu0 %vm3575_vm3, %v3576_v8  ;;  %v3163_v13 = vpack.c.bf16 %v2461_v12, %v2460_v6 }
 0x6c3   :  { %v2254_v20 = vpop.f32.mrb[36].mxu0 }
 0x6c4   :  { %v3011_v23 = vpop.f32.mrb[37].mxu0  ;;  %v2332_v24 = vmul.f32 0.03125, %v2254_v20  ;;  %v2464_v20 = vld [vmem:[#allocation9 + $0x60] sm:$0xff] }
 0x6c5   :  { %v2465_v23 = vld [vmem:[#allocation9 + $0x68] sm:$0xff] }
 0x6c6   :  { %v2334_v26 = vmul.f32 %v2332_v24, %v2332_v24 }
 0x6cb   :  { %v2328_v25 = vpop.f32.mrb[38].mxu0 }
 0x6cc   :  { %v2333_v30 = vmul.f32 0.03125, %v2328_v25  ;;  %v3022_v10 = vpop.f32.mrb[39].mxu0  ;;  %v2466_v25 = vld [vmem:[#allocation9 + $0x70] sm:$0xff] }
 0x6cd   :  { %v2547_v10 = vld [vmem:[#allocation10] sm:$0xff] }
 0x6ce   :  { %v2335_v15 = vsub.f32 %v2333_v30, %v2334_v26  ;;  %v2467_v26 = vld [vmem:[#allocation9 + $0x78] sm:$0xff] }
 0x6cf   :  { %v3172_v30 = vpack.c.bf16 %v2467_v26, %v2466_v25 }
 0x6d0   :  { %v2336_v9 = vmax.f32 %v2335_v15, 0.0  ;;  %v2548_v15 = vld [vmem:[#allocation10 + $0x8] sm:$0xff] }
 0x6d2   :  { %v2337_v46 = vadd.f32 1e-05, %v2336_v9  ;;  %v2549_v9 = vld [vmem:[#allocation10 + $0x10] sm:$0xff] }
 0x6d4   :  { %3437 = vrsqrt.f32 %v2337_v46  ;;  %v3175_v46 = vpack.c.bf16 %v2548_v15, %v2547_v10 }
 0x6d6   :  { %3176 = vmatpush3.bf16.msra.mxu1 %v3175_v46 }
 0x6d7   :  { %3177 = vmatprep.subr.bf16.mxu1 %v3574_v7 }
 0x6de   :  { %v3438_v11 = vpop.eup %3437 }
 0x6df   :  { %v2340_v34 = vmul.f32 %v3438_v11, %v2339_v45  ;;  %v2550_v45 = vld [vmem:[#allocation10 + $0x18] sm:$0xff] }
 0x6e0   :  { %v3178_v11 = vpack.c.bf16 %v2550_v45, %v2549_v9 }
 0x6e1   :  { %v2342_v36 = vmul.f32 %v2340_v34, %v2332_v24  ;;  %v2347_v37 = vrot.slane %v2340_v34, %v3797_v5  ;;  %v3169_v24 = vpack.c.bf16 %v2465_v23, %v2464_v20  ;;  %v2551_v34 = vld [vmem:[#allocation10 + $0x20] sm:$0xff] }
 0x6e2   :  { %3179 = vmatpush3.bf16.msra.mxu1 %v3178_v11 }
 0x6e3   :  { %v2343_v38 = vsub.f32 %v2341_v35, %v2342_v36  ;;  %v2348_v40 = vmul.f32 %v2347_v37, %v2170_v51  ;;  %v2349_v39 = vmul.f32 %v2347_v37, %v2173_v53  ;;  %v2350_v54 = vmul.f32 %v2347_v37, %v2178_v62  ;;  %v2452_v53 = vld [vmem:[#allocation9] sm:$0xff]  ;;  %v2552_v35 = vld [vmem:[#allocation10 + $0x28] sm:$0xff]  ;;  %3180 = vmatprep.subr.bf16.mxu1 %v3574_v7 }
 0x6e4   :  { %v2351_v3 = vmul.f32 %v2347_v37, %v2181_v56  ;;  %v3151_v58 = vpack.c.bf16 %v2453_v55, %v2452_v53  ;;  %v2456_v62 = vld [vmem:[#allocation9 + $0x20] sm:$0xff]  ;;  %v3181_v36 = vpack.c.bf16 %v2552_v35, %v2551_v34  ;;  %v2553_v37 = vld [vmem:[#allocation10 + $0x30] sm:$0xff] }
 0x6e5   :  { %v2356_v22 = vrot.slane %v2343_v38, %v3797_v5  ;;  %v3157_v56 = vpack.c.bf16 %v2457_v63, %v2456_v62  ;;  %v2554_v38 = vld [vmem:[#allocation10 + $0x38] sm:$0xff] }
 0x6e6   :  { %3182 = vmatpush3.bf16.msra.mxu1 %v3181_v36 }
 0x6e7   :  { %v2358_v16 = vadd.f32 %v2356_v22, %v2348_v40  ;;  %v2359_v32 = vadd.f32 %v2356_v22, %v2349_v39  ;;  %v2360_v14 = vadd.f32 %v2356_v22, %v2350_v54  ;;  %v2361_v41 = vadd.f32 %v2356_v22, %v2351_v3  ;;  %3183 = vmatprep.subr.bf16.mxu1 %v3574_v7  ;;  %v2555_v22 = vld [vmem:[#allocation10 + $0x40] sm:$0xff]  ;;  %v2556_v39 = vld [vmem:[#allocation10 + $0x48] sm:$0xff]  ;;  %v2557_v3 = vld [vmem:[#allocation10 + $0x50] sm:$0xff] }
 0x6e8   :  { %v3184_v40 = vpack.c.bf16 %v2554_v38, %v2553_v37  ;;  %v3187_v54 = vpack.c.bf16 %v2556_v39, %v2555_v22 }
 0x6e9   :  { %v2362_v17 = vmul.f32 0.5, %v2358_v16  ;;  %v2363_v27 = vmul.f32 0.5, %v2359_v32  ;;  %v2364_v29 = vmul.f32 0.5, %v2360_v14  ;;  %v2365_v42 = vmul.f32 0.5, %v2361_v41  ;;  %v2558_v16 = vld [vmem:[#allocation10 + $0x58] sm:$0xff]  ;;  %v2559_v14 = vld [vmem:[#allocation10 + $0x60] sm:$0xff] }
 0x6ea   :  { %3185 = vmatpush3.bf16.msra.mxu1 %v3184_v40  ;;  %v3190_v32 = vpack.c.bf16 %v2558_v16, %v2557_v3  ;;  %v2560_v41 = vld [vmem:[#allocation10 + $0x68] sm:$0xff] }
 0x6eb   :  { %3439 = vtanh.f32 %v2362_v17  ;;  %3186 = vmatprep.subr.bf16.mxu1 %v3574_v7  ;;  %v3193_v17 = vpack.c.bf16 %v2560_v41, %v2559_v14 }
 0x6ec   :  { %3441 = vtanh.f32 %v2363_v27 }
 0x6ed   :  { %3443 = vtanh.f32 %v2364_v29 }
 0x6ee   :  { %3445 = vtanh.f32 %v2365_v42  ;;  %3188 = vmatpush3.bf16.msra.mxu1 %v3187_v54  ;;  %v2561_v42 = vld [vmem:[#allocation10 + $0x70] sm:$0xff] }
 0x6ef   :  { %3189 = vmatprep.subr.bf16.mxu1 %v3574_v7 }
 0x6f2   :  { %3191 = vmatpush3.bf16.msra.mxu1 %v3190_v32 }
 0x6f3   :  { %3192 = vmatprep.subr.bf16.mxu1 %v3574_v7 }
 0x6f5   :  { %v3440_v43 = vpop.eup %3439 }
 0x6f6   :  { %v3442_v2 = vpop.eup %3441  ;;  %v2370_v33 = vmul.f32 0.5, %v3440_v43  ;;  %3194 = vmatpush3.bf16.msra.mxu1 %v3193_v17  ;;  %v2562_v43 = vld [vmem:[#allocation10 + $0x78] sm:$0xff] }
 0x6f7   :  { %v3444_v47 = vpop.eup %3443  ;;  %v2371_v5 = vmul.f32 0.5, %v3442_v2  ;;  %3195 = vmatprep.subr.bf16.mxu1 %v3574_v7  ;;  %v3196_v2 = vpack.c.bf16 %v2562_v43, %v2561_v42 }
 0x6f8   :  { %v3446_v21 = vpop.eup %3445  ;;  %v2374_v48 = vadd.f32 0.5, %v2370_v33  ;;  %v2372_v44 = vmul.f32 0.5, %v3444_v47  ;;  %v2821_v33 = vld [vmem:[%s4066_s15] ss:$0 sm:$0xff]  ;;  %s3535_s15 = scalar_lea.vmem %s2648_s4, 32 }
 0x6f9   :  { %v2375_v28 = vadd.f32 0.5, %v2371_v5  ;;  %v2373_v49 = vmul.f32 0.5, %v3446_v21  ;;  %v2545_v5 = vld [vmem:[%s4067_s16] sm:$0x3]  ;;  %p3536_p4 = scmp.ne.s32.totalorder %s2648_s4, %s3535_s15  ;;  %p3541_p6 = scmp.lt.s32.totalorder %s3535_s15, %s3535_s15 }
 0x6fa   :  { %v2376_v31 = vadd.f32 0.5, %v2372_v44  ;;  %3197 = vmatpush3.bf16.msra.mxu1 %v3196_v2 }
 0x6fb   :  { %v3145_v50 = vpack.c.bf16 %v2375_v28, %v2374_v48  ;;  %v2377_v51 = vadd.f32 0.5, %v2373_v49  ;;  %p3542_p7 = por %p3541_p6, %p3540_p5 }
 0x6fd   :  { %3146 = vmatpush3.bf16.msra.mxu0 %v3145_v50  ;;  %v3148_v52 = vpack.c.bf16 %v2377_v51, %v2376_v31  ;;  %p3543_p8 = pnand %p3542_p7, %p3536_p4 }
 0x6fe   :  { %3147 = vmatprep.subr.bf16.mxu0 %v3574_v7 }
 0x701   :  { %3149 = vmatpush3.bf16.msra.mxu0 %v3148_v52 }
 0x702   :  { %3150 = vmatprep.subr.bf16.mxu0 %v3574_v7 }
 0x704   :  { %3032 = vmatmul.mubr.msk.f32.vlgmr.msra.gmra.mrb[40].mxu0 %vm198_vm4, %v2378_v57 }
 0x705   :  { %3152 = vmatpush3.bf16.msra.mxu0 %v3151_v58  ;;  %3066 = vmatprep.mubr.msk.f32.mxu0 %vm3575_vm3, %v3576_v8  ;;  %v2462_v8 = vld [vmem:[#allocation9 + $0x50] sm:$0xff] }
 0x706   :  { %3153 = vmatprep.subr.bf16.mxu0 %v3574_v7  ;;  %v3166_v19 = vpack.c.bf16 %v2463_v18, %v2462_v8 }
 0x709   :  { %3155 = vmatpush3.bf16.msra.mxu0 %v3154_v61 }
 0x70a   :  { %3156 = vmatprep.subr.bf16.mxu0 %v3574_v7 }
 0x70d   :  { %3158 = vmatpush3.bf16.msra.mxu0 %v3157_v56 }
 0x70e   :  { %3159 = vmatprep.subr.bf16.mxu0 %v3574_v7 }
 0x711   :  { %3161 = vmatpush3.bf16.msra.mxu0 %v3160_v0 }
 0x712   :  { %3162 = vmatprep.subr.bf16.mxu0 %v3574_v7 }
 0x715   :  { %3164 = vmatpush3.bf16.msra.mxu0 %v3163_v13 }
 0x716   :  { %3165 = vmatprep.subr.bf16.mxu0 %v3574_v7 }
 0x719   :  { %3167 = vmatpush3.bf16.msra.mxu0 %v3166_v19 }
 0x71a   :  { %3168 = vmatprep.subr.bf16.mxu0 %v3574_v7 }
 0x71d   :  { %3170 = vmatpush3.bf16.msra.mxu0 %v3169_v24 }
 0x71e   :  { %3171 = vmatprep.subr.bf16.mxu0 %v3574_v7  ;;  %v2822_v7 = vld [vmem:[%s4069_s18] ss:$0 sm:$0xff] }
 0x721   :  { %3173 = vmatpush3.bf16.msra.mxu0 %v3172_v30 }
 0x7d7   :  { %v2448_v27 = vpop.f32.mrb[40].mxu0 }
 0x7d8   :  { %v3033_v29 = vpop.f32.mrb[41].mxu0  ;;  %3067 = vmatmul.mubr.f32.vlgmr.msra.gmra.mrb[42].mxu0 %v2448_v27 }
 0x8ab   :  { %v2541_v47 = vpop.f32.mrb[42].mxu0 }
 0x8ac   :  { %v2542_v21 = vadd.f32 %v2821_v33, %v2541_v47  ;;  %v3068_v48 = vpop.f32.mrb[43].mxu0 }
 0x8ae   :  { %v2546_v44 = vmul.f32 %v2545_v5, %v2542_v21 }
 0x8b0   :  { %3102 = vmatmul.mubr.f32.vlgmr.msra.gmra.mrb[8].mxu1 %v2546_v44 }
 0x983   :  { %v2636_v28 = vpop.f32.mrb[8].mxu1 }
 0x984   :  { %v2637_v49 = vadd.f32 %v2822_v7, %v2636_v28  ;;  %v3103_v31 = vpop.f32.mrb[9].mxu1 }
 0x986   :  { %2640 = vst [vmem:[#allocation12] sm:$0x3] %v2637_v49 }
 0x987   :  { %3546 = shalt.err (!%p3543_p8)
}
 0x988   :  { %s3547_s29 = scalar_lea.hbm %s4070_s19, 32 }
 0x989   :  { %p3548_p9 = scmp.ne.s32.totalorder %s4070_s19, %s3547_s29  ;;  %p3551_p10 = scmp.lt.u32.totalorder %s3547_s29, %s4070_s19 }
 0x98b   :  { %p3553_p11 = pnand %p3551_p10, %p3548_p9 }
 0x98d   :  { %3556 = shalt.err (!%p3553_p11)
}
 0x98e   :  { %2650 = dma.vmem_to_hbm [thread:$0]  %s2648_s4, 32, %s4070_s19, [#allocation6]  }
 0x98f   :  { %3563 = dma.done.wait [#allocation6], 32  }
 0x990   :  { %3564 = vsyncadd [#allocation6], 4294967264 }
 0x991   :  { %2654 = vsyncpa [#allocation5], 1 }
 0x992   :  { %2655 = vsyncpa [#allocation8], 1 }
 0x993   :  { %2656 = vsyncpa [#allocation11], 1 }
 0x994   :  { %2657 = vsyncpa [#allocation6], 1 }

</bundles_post_ra>
